<compile_context>
chip_gen: v7x
topology: tpu7x:2x2x1
jax: 0.10.0
libtpu: 0.0.40
codegen_flags: <defaults>
</compile_context>

<pallas_src>
import math

import jax
import jax.numpy as jnp
from jax.experimental import pallas as pl
from jax.experimental.pallas import tpu as pltpu


def _gelu_exact(x):
    # Matches torch.nn.GELU() default (erf-based, not tanh approximation).
    return 0.5 * x * (1.0 + jax.lax.erf(x * (1.0 / math.sqrt(2.0))))


def _round_up(x, m):
    return (x + m - 1) // m * m


def _pick_tn(dlp, tn_req):
    """Largest multiple of 128 that is <= tn_req (rounded) and divides dlp."""
    tn_req = max(128, min(_round_up(tn_req, 128), dlp))
    for cand in range(tn_req, 127, -128):
        if dlp % cand == 0:
            return cand
    return 128


def mlp_projector_kernel(x_ref, w1_ref, b1_ref, w2_ref, b2_ref, o_ref, h_ref):
    # x_ref : (tm, Dv)        token tile (compute dtype, e.g. bf16)
    # w1_ref: (Dv, Dlp)       resident first-layer weight (compute dtype)
    # b1_ref: (1, Dlp)        f32
    # w2_ref: (Dlp, tn)       streamed second-layer weight column tile (compute dtype)
    # b2_ref: (1, tn)         f32
    # o_ref : (tm, tn)        output tile
    # h_ref : (tm, Dlp)       persistent scratch (compute dtype): GELU(x @ w1 + b1),
    #                         computed once per token tile (at j == 0), reused for all j.
    tn = w2_ref.shape[1]
    dlp = h_ref.shape[1]

    @pl.when(pl.program_id(1) == 0)
    def _():
        x = x_ref[...]
        # Chunk layer 1 over output columns: keeps the transient f32 matmul result at
        # (tm, tn) and lets the GELU of chunk c overlap the MXU pushes of chunk c+1.
        for c in range(dlp // tn):                       # static trip count
            sl = pl.ds(c * tn, tn)                       # static, 128-aligned slice
            h = jnp.dot(x, w1_ref[:, sl], preferred_element_type=jnp.float32)
            h = _gelu_exact(h + b1_ref[:, sl])           # bias + GELU in f32
            h_ref[:, sl] = h.astype(h_ref.dtype)         # store hidden in compute dtype

    y = jnp.dot(h_ref[...], w2_ref[...], preferred_element_type=jnp.float32)
    o_ref[...] = (y + b2_ref[...]).astype(o_ref.dtype)


def mlp_projector(img_patches, w1, b1, w2, b2, *, tm=None, tn=None,
                  compute_dtype=jnp.bfloat16, vmem_limit_bytes=None,
                  w2_buffers=2):
    """img_patches: [B, P, Dv]; w1: [Dv, Dl] (torch W1.T); b1: [Dl]; w2: [Dl, Dl]; b2: [Dl].

    w2_buffers: pipeline depth for the streamed w2 column tiles (sweep 2 vs 3 on
    mem-leaning generations once tm is large)."""
    B, P, Dv = img_patches.shape
    Dl = w1.shape[1]
    M = B * P
    out_dtype = img_patches.dtype
    cdt = jnp.dtype(compute_dtype)
    out_it = jnp.dtype(out_dtype).itemsize

    # ---- per-generation VMEM budget (v5e/v6e: 128 MiB, v7x: 64 MiB per TC) ----
    if vmem_limit_bytes is None:
        try:
            cap = int(pltpu.get_tpu_info().vmem_capacity_bytes)
        except Exception:
            cap = 64 * 1024 * 1024                      # conservative (v7x-sized) default
        vmem_limit_bytes = min(int(cap * 0.75), 100 * 1024 * 1024)

    # ---- feature padding decoupled from tn: pad Dl to 128 only, tn divides Dlp ----
    Dlp = _round_up(Dl, 128)
    tn = _pick_tn(Dlp, 512 if tn is None else tn)       # multiple of 128 -> lane-dense vst

    # ---- token tile: multiple of 16 (bf16 sublane packing); >=2 balanced tiles when
    #      M is large so megacore / v7x's 2 TensorCores both get work ----
    tm_req = 512 if tm is None else tm
    tm = min(_round_up(tm_req, 16), _round_up(M, 16))
    if M >= 256:
        tm = min(tm, _round_up(-(-M // 2), 16))
    tm = max(tm, 16)

    # ---- shrink tiles until the rough VMEM footprint fits the budget ----
    def _vmem_bytes(tm_, tn_):
        return (2 * tm_ * Dv * cdt.itemsize             # x, double buffered
                + 1 * Dv * Dlp * cdt.itemsize           # w1 resident (single buffered)
                + Dlp * 4                               # b1
                + w2_buffers * Dlp * tn_ * cdt.itemsize # streamed w2 column tiles
                + 2 * tn_ * 4                           # b2
                + 2 * tm_ * tn_ * out_it                # out, double buffered
                + tm_ * Dlp * cdt.itemsize              # h scratch (compute dtype)
                + 2 * tm_ * tn_ * 4)                    # transient f32 matmul results

    while _vmem_bytes(tm, tn) > int(0.9 * vmem_limit_bytes) and tm > 128:
        tm = max(128, _round_up(tm // 2, 16))
    while _vmem_bytes(tm, tn) > int(0.9 * vmem_limit_bytes) and tn > 128:
        tn = _pick_tn(Dlp, tn - 128)
    # TODO(synk): for very large Dv/Dl (resident w1 alone exceeding the budget, e.g.
    # Dl>=8192 on v7x) stream w1 in (Dv, tn) column tiles over an extra grid axis.

    Mp = _round_up(M, tm)

    # ---- pad (zero padding is exact for this MLP: GELU(0)=0) and cast ----
    x = img_patches.reshape(M, Dv).astype(compute_dtype)
    if Mp != M:
        x = jnp.pad(x, ((0, Mp - M), (0, 0)))
    if Dlp != Dl:
        w1 = jnp.pad(w1, ((0, 0), (0, Dlp - Dl)))
        b1 = jnp.pad(b1, ((0, Dlp - Dl),))
        w2 = jnp.pad(w2, ((0, Dlp - Dl), (0, Dlp - Dl)))
        b2 = jnp.pad(b2, ((0, Dlp - Dl),))
    w1 = w1.astype(compute_dtype)
    w2 = w2.astype(compute_dtype)
    b1_2d = b1.reshape(1, Dlp).astype(jnp.float32)
    b2_2d = b2.reshape(1, Dlp).astype(jnp.float32)

    grid = (Mp // tm, Dlp // tn)
    n_token_tiles = grid[0]

    cost = pl.CostEstimate(
        flops=2 * M * Dv * Dl + 2 * M * Dl * Dl,
        transcendentals=M * Dl,
        bytes_accessed=int(
            Mp * Dv * cdt.itemsize                                   # x
            + Dv * Dlp * cdt.itemsize                                # w1 (resident, once)
            + n_token_tiles * (Dlp * Dlp * cdt.itemsize + Dlp * 4)   # w2/b2 re-streamed per tile
            + Dlp * 4                                                # b1
            + Mp * Dlp * out_it),                                    # output
    )

    def _run(resident_buffers):
        resident_mode = pl.Buffered(resident_buffers) if resident_buffers != 2 else None
        w2_mode = pl.Buffered(w2_buffers) if w2_buffers != 2 else None
        return pl.pallas_call(
            mlp_projector_kernel,
            out_shape=jax.ShapeDtypeStruct((Mp, Dlp), out_dtype),
            grid_spec=pltpu.PrefetchScalarGridSpec(
                num_scalar_prefetch=0,
                grid=grid,
                in_specs=[
                    pl.BlockSpec((tm, Dv), lambda i, j: (i, 0)),        # x token tile
                    pl.BlockSpec((Dv, Dlp), lambda i, j: (0, 0),        # w1 (resident)
                                 pipeline_mode=resident_mode),
                    pl.BlockSpec((1, Dlp), lambda i, j: (0, 0),         # b1 (resident)
                                 pipeline_mode=resident_mode),
                    pl.BlockSpec((Dlp, tn), lambda i, j: (0, j),        # w2 column tile
                                 pipeline_mode=w2_mode),
                    pl.BlockSpec((1, tn), lambda i, j: (0, j)),         # b2 tile
                ],
                out_specs=pl.BlockSpec((tm, tn), lambda i, j: (i, j)),
                scratch_shapes=[pltpu.VMEM((tm, Dlp), compute_dtype)],  # bf16 h scratch
            ),
            compiler_params=pltpu.CompilerParams(
                dimension_semantics=("parallel", "arbitrary"),
                vmem_limit_bytes=vmem_limit_bytes,
            ),
            cost_estimate=cost,
        )(x, w1, b1_2d, w2, b2_2d)

    try:
        out = _run(resident_buffers=1)   # single-buffer the constant-index w1/b1 blocks
    except Exception:
        out = _run(resident_buffers=2)   # fallback if single buffering fails to lower

    return out[:M, :Dl].reshape(B, P, Dl)


def init_linear_params(key, in_dim, out_dim, dtype=jnp.float32):
    # Deterministic analogue of torch.nn.Linear default init.
    kw, kb = jax.random.split(key)
    bound = 1.0 / math.sqrt(in_dim)
    # weight stored as [in, out] (== torch weight.T) so the kernel computes x @ W
    w = jax.random.uniform(kw, (in_dim, out_dim), dtype, -bound, bound)
    b = jax.random.uniform(kb, (out_dim,), dtype, -bound, bound)
    return w, b


if __name__ == "__main__":
    key = jax.random.PRNGKey(0)
    k_x, k_l1, k_l2 = jax.random.split(key, 3)

    # Small but lane-realistic shapes; exercises M-padding, Dl-padding (320 -> 384),
    # a multi-tile (3x3) grid, and h-scratch reuse across j.  (Auto defaults tm=512 /
    # tn<=512 are intended for real sizes; small tiles are passed explicitly here.)
    B, P = 2, 72            # M = 144 tokens -> padded to 192 with tm=64
    vision_dim = 256
    llm_dim = 320           # Dlp = 384 (tn = 128 -> 3 j-tiles)

    img_patches = jax.random.normal(k_x, (B, P, vision_dim), jnp.float32)
    w1, b1 = init_linear_params(k_l1, vision_dim, llm_dim)
    w2, b2 = init_linear_params(k_l2, llm_dim, llm_dim)

    out = mlp_projector(img_patches, w1, b1, w2, b2, tm=64, tn=128)
    out = jax.block_until_ready(out)
    assert out.shape == (B, P, llm_dim)

    # Reference 1: identical numerics (bf16 operands + bf16 hidden, f32 accumulation).
    xb = img_patches.astype(jnp.bfloat16)
    h_ref = _gelu_exact(
        jnp.dot(xb, w1.astype(jnp.bfloat16), preferred_element_type=jnp.float32) + b1)
    ref_bf16 = jnp.dot(h_ref.astype(jnp.bfloat16), w2.astype(jnp.bfloat16),
                       preferred_element_type=jnp.float32) + b2
    assert jnp.allclose(out, ref_bf16, atol=2e-3, rtol=2e-3), \
        float(jnp.max(jnp.abs(out - ref_bf16)))

    # Reference 2: full-f32 torch-equivalent forward (loose tol: bf16 compute in kernel).
    ref_f32 = _gelu_exact(img_patches @ w1 + b1) @ w2 + b2
    assert jnp.allclose(out, ref_f32, atol=5e-2, rtol=5e-2)

    print("KERNEL_OK")
</pallas_src>

<mosaic_0001>
module attributes {stable_mosaic.version = 11 : i64} {
  func.func @mlp_projector_kernel(%arg0: i32, %arg1: i32, %arg2: memref<64x256xbf16, #tpu.memory_space<vmem>>, %arg3: memref<256x384xbf16, #tpu.memory_space<vmem>>, %arg4: memref<1x384xf32, #tpu.memory_space<vmem>>, %arg5: memref<384x128xbf16, #tpu.memory_space<vmem>>, %arg6: memref<1x128xf32, #tpu.memory_space<vmem>>, %arg7: memref<64x128xf32, #tpu.memory_space<vmem>>, %arg8: memref<64x384xbf16, #tpu.memory_space<vmem>>) attributes {dimension_semantics = [#tpu.dimension_semantics<parallel>, #tpu.dimension_semantics<arbitrary>], iteration_bounds = array<i64: 3, 3>, scalar_prefetch = 0 : i64, scratch_operands = 1 : i64, tpu.core_type = #tpu.core_type<tc>, window_params = [{transform_indices = @transform_0, window_bounds = array<i64: 64, 256>}, {pipeline_mode = #tpu.pipeline_mode<synchronous>, transform_indices = @transform_1, window_bounds = array<i64: 256, 384>}, {pipeline_mode = #tpu.pipeline_mode<synchronous>, transform_indices = @transform_2, window_bounds = array<i64: 1, 384>}, {transform_indices = @transform_3, window_bounds = array<i64: 384, 128>}, {transform_indices = @transform_4, window_bounds = array<i64: 1, 128>}, {transform_indices = @transform_5, window_bounds = array<i64: 64, 128>}]} {
    %c0_i32 = arith.constant 0 : i32
    %0 = arith.cmpi eq, %arg1, %c0_i32 : i32
    %1 = arith.extui %0 : i1 to i32
    %c0_i32_0 = arith.constant 0 : i32
    %2 = arith.cmpi ne, %1, %c0_i32_0 : i32
    scf.if %2 {
      %c0_8 = arith.constant 0 : index
      %c0_9 = arith.constant 0 : index
      %10 = vector.load %arg2[%c0_8, %c0_9] : memref<64x256xbf16, #tpu.memory_space<vmem>>, vector<64x256xbf16>
      %c0_10 = arith.constant 0 : index
      %c0_11 = arith.constant 0 : index
      %11 = vector.load %arg3[%c0_10, %c0_11] : memref<256x384xbf16, #tpu.memory_space<vmem>>, vector<256x128xbf16>
      %cst_12 = arith.constant dense<0.000000e+00> : vector<64x128xf32>
      %12 = tpu.matmul %10, %11, %cst_12 {dimension_numbers = #tpu.dot_dimension_numbers<[1], [0], [0], [1], [0, 0, 1, 1], [], []>} : vector<64x256xbf16>, vector<256x128xbf16>, vector<64x128xf32> -> vector<64x128xf32>
      %c0_13 = arith.constant 0 : index
      %c0_14 = arith.constant 0 : index
      %13 = vector.load %arg4[%c0_13, %c0_14] : memref<1x384xf32, #tpu.memory_space<vmem>>, vector<1x128xf32>
      %14 = vector.broadcast %13 : vector<1x128xf32> to vector<64x128xf32>
      %15 = arith.addf %12, %14 : vector<64x128xf32>
      %cst_15 = arith.constant 5.000000e-01 : f32
      %16 = vector.broadcast %cst_15 : f32 to vector<64x128xf32>
      %17 = arith.mulf %16, %15 : vector<64x128xf32>
      %cst_16 = arith.constant 0.707106769 : f32
      %18 = vector.broadcast %cst_16 : f32 to vector<64x128xf32>
      %19 = arith.mulf %15, %18 : vector<64x128xf32>
      %20 = math.erf %19 : vector<64x128xf32>
      %cst_17 = arith.constant 1.000000e+00 : f32
      %21 = vector.broadcast %cst_17 : f32 to vector<64x128xf32>
      %22 = arith.addf %21, %20 : vector<64x128xf32>
      %23 = arith.mulf %17, %22 : vector<64x128xf32>
      %24 = arith.truncf %23 : vector<64x128xf32> to vector<64x128xbf16>
      %c0_18 = arith.constant 0 : index
      %c0_19 = arith.constant 0 : index
      %25 = vector.load %arg8[%c0_18, %c0_19] : memref<64x384xbf16, #tpu.memory_space<vmem>>, vector<64x128xbf16>
      tpu.vector_store %arg8[%c0_18, %c0_19], %24 {strides = array<i32>} : memref<64x384xbf16, #tpu.memory_space<vmem>>, vector<64x128xbf16>,
      %c0_20 = arith.constant 0 : index
      %c128 = arith.constant 128 : index
      %26 = vector.load %arg3[%c0_20, %c128] : memref<256x384xbf16, #tpu.memory_space<vmem>>, vector<256x128xbf16>
      %cst_21 = arith.constant dense<0.000000e+00> : vector<64x128xf32>
      %27 = tpu.matmul %10, %26, %cst_21 {dimension_numbers = #tpu.dot_dimension_numbers<[1], [0], [0], [1], [0, 0, 1, 1], [], []>} : vector<64x256xbf16>, vector<256x128xbf16>, vector<64x128xf32> -> vector<64x128xf32>
      %c0_22 = arith.constant 0 : index
      %c128_23 = arith.constant 128 : index
      %28 = vector.load %arg4[%c0_22, %c128_23] : memref<1x384xf32, #tpu.memory_space<vmem>>, vector<1x128xf32>
      %29 = vector.broadcast %28 : vector<1x128xf32> to vector<64x128xf32>
      %30 = arith.addf %27, %29 : vector<64x128xf32>
      %cst_24 = arith.constant 5.000000e-01 : f32
      %31 = vector.broadcast %cst_24 : f32 to vector<64x128xf32>
      %32 = arith.mulf %31, %30 : vector<64x128xf32>
      %cst_25 = arith.constant 0.707106769 : f32
      %33 = vector.broadcast %cst_25 : f32 to vector<64x128xf32>
      %34 = arith.mulf %30, %33 : vector<64x128xf32>
      %35 = math.erf %34 : vector<64x128xf32>
      %cst_26 = arith.constant 1.000000e+00 : f32
      %36 = vector.broadcast %cst_26 : f32 to vector<64x128xf32>
      %37 = arith.addf %36, %35 : vector<64x128xf32>
      %38 = arith.mulf %32, %37 : vector<64x128xf32>
      %39 = arith.truncf %38 : vector<64x128xf32> to vector<64x128xbf16>
      %c0_27 = arith.constant 0 : index
      %c128_28 = arith.constant 128 : index
      %40 = vector.load %arg8[%c0_27, %c128_28] : memref<64x384xbf16, #tpu.memory_space<vmem>>, vector<64x128xbf16>
      tpu.vector_store %arg8[%c0_27, %c128_28], %39 {strides = array<i32>} : memref<64x384xbf16, #tpu.memory_space<vmem>>, vector<64x128xbf16>,
      %c0_29 = arith.constant 0 : index
      %c256 = arith.constant 256 : index
      %41 = vector.load %arg3[%c0_29, %c256] : memref<256x384xbf16, #tpu.memory_space<vmem>>, vector<256x128xbf16>
      %cst_30 = arith.constant dense<0.000000e+00> : vector<64x128xf32>
      %42 = tpu.matmul %10, %41, %cst_30 {dimension_numbers = #tpu.dot_dimension_numbers<[1], [0], [0], [1], [0, 0, 1, 1], [], []>} : vector<64x256xbf16>, vector<256x128xbf16>, vector<64x128xf32> -> vector<64x128xf32>
      %c0_31 = arith.constant 0 : index
      %c256_32 = arith.constant 256 : index
      %43 = vector.load %arg4[%c0_31, %c256_32] : memref<1x384xf32, #tpu.memory_space<vmem>>, vector<1x128xf32>
      %44 = vector.broadcast %43 : vector<1x128xf32> to vector<64x128xf32>
      %45 = arith.addf %42, %44 : vector<64x128xf32>
      %cst_33 = arith.constant 5.000000e-01 : f32
      %46 = vector.broadcast %cst_33 : f32 to vector<64x128xf32>
      %47 = arith.mulf %46, %45 : vector<64x128xf32>
      %cst_34 = arith.constant 0.707106769 : f32
      %48 = vector.broadcast %cst_34 : f32 to vector<64x128xf32>
      %49 = arith.mulf %45, %48 : vector<64x128xf32>
      %50 = math.erf %49 : vector<64x128xf32>
      %cst_35 = arith.constant 1.000000e+00 : f32
      %51 = vector.broadcast %cst_35 : f32 to vector<64x128xf32>
      %52 = arith.addf %51, %50 : vector<64x128xf32>
      %53 = arith.mulf %47, %52 : vector<64x128xf32>
      %54 = arith.truncf %53 : vector<64x128xf32> to vector<64x128xbf16>
      %c0_36 = arith.constant 0 : index
      %c256_37 = arith.constant 256 : index
      %55 = vector.load %arg8[%c0_36, %c256_37] : memref<64x384xbf16, #tpu.memory_space<vmem>>, vector<64x128xbf16>
      tpu.vector_store %arg8[%c0_36, %c256_37], %54 {strides = array<i32>} : memref<64x384xbf16, #tpu.memory_space<vmem>>, vector<64x128xbf16>,
    } else {
    }
    %c0 = arith.constant 0 : index
    %c0_1 = arith.constant 0 : index
    %3 = vector.load %arg8[%c0, %c0_1] : memref<64x384xbf16, #tpu.memory_space<vmem>>, vector<64x384xbf16>
    %c0_2 = arith.constant 0 : index
    %c0_3 = arith.constant 0 : index
    %4 = vector.load %arg5[%c0_2, %c0_3] : memref<384x128xbf16, #tpu.memory_space<vmem>>, vector<384x128xbf16>
    %cst = arith.constant dense<0.000000e+00> : vector<64x128xf32>
    %5 = tpu.matmul %3, %4, %cst {dimension_numbers = #tpu.dot_dimension_numbers<[1], [0], [0], [1], [0, 0, 1, 1], [], []>} : vector<64x384xbf16>, vector<384x128xbf16>, vector<64x128xf32> -> vector<64x128xf32>
    %c0_4 = arith.constant 0 : index
    %c0_5 = arith.constant 0 : index
    %6 = vector.load %arg6[%c0_4, %c0_5] : memref<1x128xf32, #tpu.memory_space<vmem>>, vector<1x128xf32>
    %7 = vector.broadcast %6 : vector<1x128xf32> to vector<64x128xf32>
    %8 = arith.addf %5, %7 : vector<64x128xf32>
    %c0_6 = arith.constant 0 : index
    %c0_7 = arith.constant 0 : index
    %9 = vector.load %arg7[%c0_6, %c0_7] : memref<64x128xf32, #tpu.memory_space<vmem>>, vector<64x128xf32>
    tpu.vector_store %arg7[%c0_6, %c0_7], %8 {strides = array<i32>} : memref<64x128xf32, #tpu.memory_space<vmem>>, vector<64x128xf32>,
    return
  }
  func.func @transform_0(%arg0: i32, %arg1: i32) -> (i32, i32) {
    %c0_i32 = arith.constant 0 : i32
    %c0_i32_0 = arith.constant 0 : i32
    return %arg0, %c0_i32 : i32, i32
  }
  func.func @transform_1(%arg0: i32, %arg1: i32) -> (i32, i32) {
    %c0_i32 = arith.constant 0 : i32
    %c0_i32_0 = arith.constant 0 : i32
    %c0_i32_1 = arith.constant 0 : i32
    return %c0_i32, %c0_i32_0 : i32, i32
  }
  func.func @transform_2(%arg0: i32, %arg1: i32) -> (i32, i32) {
    %c0_i32 = arith.constant 0 : i32
    %c0_i32_0 = arith.constant 0 : i32
    %c0_i32_1 = arith.constant 0 : i32
    return %c0_i32, %c0_i32_0 : i32, i32
  }
  func.func @transform_3(%arg0: i32, %arg1: i32) -> (i32, i32) {
    %c0_i32 = arith.constant 0 : i32
    %c0_i32_0 = arith.constant 0 : i32
    return %c0_i32, %arg1 : i32, i32
  }
  func.func @transform_4(%arg0: i32, %arg1: i32) -> (i32, i32) {
    %c0_i32 = arith.constant 0 : i32
    %c0_i32_0 = arith.constant 0 : i32
    return %c0_i32, %arg1 : i32, i32
  }
  func.func @transform_5(%arg0: i32, %arg1: i32) -> (i32, i32) {
    %c0_i32 = arith.constant 0 : i32
    return %arg0, %arg1 : i32, i32
  }
}

module attributes {stable_mosaic.version = 11 : i64} {
  func.func @mlp_projector_kernel(%arg0: i32, %arg1: i32, %arg2: memref<64x256xbf16, #tpu.memory_space<vmem>>, %arg3: memref<256x384xbf16, #tpu.memory_space<vmem>>, %arg4: memref<1x384xf32, #tpu.memory_space<vmem>>, %arg5: memref<384x128xbf16, #tpu.memory_space<vmem>>, %arg6: memref<1x128xf32, #tpu.memory_space<vmem>>, %arg7: memref<64x128xf32, #tpu.memory_space<vmem>>, %arg8: memref<64x384xbf16, #tpu.memory_space<vmem>>) attributes {dimension_semantics = [#tpu.dimension_semantics<parallel>, #tpu.dimension_semantics<arbitrary>], iteration_bounds = array<i64: 3, 3>, scalar_prefetch = 0 : i64, scratch_operands = 1 : i64, tpu.core_type = #tpu.core_type<tc>, window_params = [{transform_indices = @transform_0, window_bounds = array<i64: 64, 256>}, {pipeline_mode = #tpu.pipeline_mode<synchronous>, transform_indices = @transform_1, window_bounds = array<i64: 256, 384>}, {pipeline_mode = #tpu.pipeline_mode<synchronous>, transform_indices = @transform_2, window_bounds = array<i64: 1, 384>}, {transform_indices = @transform_3, window_bounds = array<i64: 384, 128>}, {transform_indices = @transform_4, window_bounds = array<i64: 1, 128>}, {transform_indices = @transform_5, window_bounds = array<i64: 64, 128>}]} {
    %c0_i32 = arith.constant 0 : i32
    %0 = arith.cmpi eq, %arg1, %c0_i32 : i32
    %1 = arith.extui %0 : i1 to i32
    %c0_i32_0 = arith.constant 0 : i32
    %2 = arith.cmpi ne, %1, %c0_i32_0 : i32
    scf.if %2 {
      %c0_8 = arith.constant 0 : index
      %c0_9 = arith.constant 0 : index
      %10 = vector.load %arg2[%c0_8, %c0_9] : memref<64x256xbf16, #tpu.memory_space<vmem>>, vector<64x256xbf16>
      %c0_10 = arith.constant 0 : index
      %c0_11 = arith.constant 0 : index
      %11 = vector.load %arg3[%c0_10, %c0_11] : memref<256x384xbf16, #tpu.memory_space<vmem>>, vector<256x128xbf16>
      %cst_12 = arith.constant dense<0.000000e+00> : vector<64x128xf32>
      %12 = tpu.matmul %10, %11, %cst_12 {dimension_numbers = #tpu.dot_dimension_numbers<[1], [0], [0], [1], [0, 0, 1, 1], [], []>} : vector<64x256xbf16>, vector<256x128xbf16>, vector<64x128xf32> -> vector<64x128xf32>
      %c0_13 = arith.constant 0 : index
      %c0_14 = arith.constant 0 : index
      %13 = vector.load %arg4[%c0_13, %c0_14] : memref<1x384xf32, #tpu.memory_space<vmem>>, vector<1x128xf32>
      %14 = vector.broadcast %13 : vector<1x128xf32> to vector<64x128xf32>
      %15 = arith.addf %12, %14 : vector<64x128xf32>
      %cst_15 = arith.constant 5.000000e-01 : f32
      %16 = vector.broadcast %cst_15 : f32 to vector<64x128xf32>
      %17 = arith.mulf %16, %15 : vector<64x128xf32>
      %cst_16 = arith.constant 0.707106769 : f32
      %18 = vector.broadcast %cst_16 : f32 to vector<64x128xf32>
      %19 = arith.mulf %15, %18 : vector<64x128xf32>
      %20 = math.erf %19 : vector<64x128xf32>
      %cst_17 = arith.constant 1.000000e+00 : f32
      %21 = vector.broadcast %cst_17 : f32 to vector<64x128xf32>
      %22 = arith.addf %21, %20 : vector<64x128xf32>
      %23 = arith.mulf %17, %22 : vector<64x128xf32>
      %24 = arith.truncf %23 : vector<64x128xf32> to vector<64x128xbf16>
      %c0_18 = arith.constant 0 : index
      %c0_19 = arith.constant 0 : index
      %25 = vector.load %arg8[%c0_18, %c0_19] : memref<64x384xbf16, #tpu.memory_space<vmem>>, vector<64x128xbf16>
      tpu.vector_store %arg8[%c0_18, %c0_19], %24 {strides = array<i32>} : memref<64x384xbf16, #tpu.memory_space<vmem>>, vector<64x128xbf16>,
      %c0_20 = arith.constant 0 : index
      %c128 = arith.constant 128 : index
      %26 = vector.load %arg3[%c0_20, %c128] : memref<256x384xbf16, #tpu.memory_space<vmem>>, vector<256x128xbf16>
      %cst_21 = arith.constant dense<0.000000e+00> : vector<64x128xf32>
      %27 = tpu.matmul %10, %26, %cst_21 {dimension_numbers = #tpu.dot_dimension_numbers<[1], [0], [0], [1], [0, 0, 1, 1], [], []>} : vector<64x256xbf16>, vector<256x128xbf16>, vector<64x128xf32> -> vector<64x128xf32>
      %c0_22 = arith.constant 0 : index
      %c128_23 = arith.constant 128 : index
      %28 = vector.load %arg4[%c0_22, %c128_23] : memref<1x384xf32, #tpu.memory_space<vmem>>, vector<1x128xf32>
      %29 = vector.broadcast %28 : vector<1x128xf32> to vector<64x128xf32>
      %30 = arith.addf %27, %29 : vector<64x128xf32>
      %cst_24 = arith.constant 5.000000e-01 : f32
      %31 = vector.broadcast %cst_24 : f32 to vector<64x128xf32>
      %32 = arith.mulf %31, %30 : vector<64x128xf32>
      %cst_25 = arith.constant 0.707106769 : f32
      %33 = vector.broadcast %cst_25 : f32 to vector<64x128xf32>
      %34 = arith.mulf %30, %33 : vector<64x128xf32>
      %35 = math.erf %34 : vector<64x128xf32>
      %cst_26 = arith.constant 1.000000e+00 : f32
      %36 = vector.broadcast %cst_26 : f32 to vector<64x128xf32>
      %37 = arith.addf %36, %35 : vector<64x128xf32>
      %38 = arith.mulf %32, %37 : vector<64x128xf32>
      %39 = arith.truncf %38 : vector<64x128xf32> to vector<64x128xbf16>
      %c0_27 = arith.constant 0 : index
      %c128_28 = arith.constant 128 : index
      %40 = vector.load %arg8[%c0_27, %c128_28] : memref<64x384xbf16, #tpu.memory_space<vmem>>, vector<64x128xbf16>
      tpu.vector_store %arg8[%c0_27, %c128_28], %39 {strides = array<i32>} : memref<64x384xbf16, #tpu.memory_space<vmem>>, vector<64x128xbf16>,
      %c0_29 = arith.constant 0 : index
      %c256 = arith.constant 256 : index
      %41 = vector.load %arg3[%c0_29, %c256] : memref<256x384xbf16, #tpu.memory_space<vmem>>, vector<256x128xbf16>
      %cst_30 = arith.constant dense<0.000000e+00> : vector<64x128xf32>
      %42 = tpu.matmul %10, %41, %cst_30 {dimension_numbers = #tpu.dot_dimension_numbers<[1], [0], [0], [1], [0, 0, 1, 1], [], []>} : vector<64x256xbf16>, vector<256x128xbf16>, vector<64x128xf32> -> vector<64x128xf32>
      %c0_31 = arith.constant 0 : index
      %c256_32 = arith.constant 256 : index
      %43 = vector.load %arg4[%c0_31, %c256_32] : memref<1x384xf32, #tpu.memory_space<vmem>>, vector<1x128xf32>
      %44 = vector.broadcast %43 : vector<1x128xf32> to vector<64x128xf32>
      %45 = arith.addf %42, %44 : vector<64x128xf32>
      %cst_33 = arith.constant 5.000000e-01 : f32
      %46 = vector.broadcast %cst_33 : f32 to vector<64x128xf32>
      %47 = arith.mulf %46, %45 : vector<64x128xf32>
      %cst_34 = arith.constant 0.707106769 : f32
      %48 = vector.broadcast %cst_34 : f32 to vector<64x128xf32>
      %49 = arith.mulf %45, %48 : vector<64x128xf32>
      %50 = math.erf %49 : vector<64x128xf32>
      %cst_35 = arith.constant 1.000000e+00 : f32
      %51 = vector.broadcast %cst_35 : f32 to vector<64x128xf32>
      %52 = arith.addf %51, %50 : vector<64x128xf32>
      %53 = arith.mulf %47, %52 : vector<64x128xf32>
      %54 = arith.truncf %53 : vector<64x128xf32> to vector<64x128xbf16>
      %c0_36 = arith.constant 0 : index
      %c256_37 = arith.constant 256 : index
      %55 = vector.load %arg8[%c0_36, %c256_37] : memref<64x384xbf16, #tpu.memory_space<vmem>>, vector<64x128xbf16>
      tpu.vector_store %arg8[%c0_36, %c256_37], %54 {strides = array<i32>} : memref<64x384xbf16, #tpu.memory_space<vmem>>, vector<64x128xbf16>,
    } else {
    }
    %c0 = arith.constant 0 : index
    %c0_1 = arith.constant 0 : index
    %3 = vector.load %arg8[%c0, %c0_1] : memref<64x384xbf16, #tpu.memory_space<vmem>>, vector<64x384xbf16>
    %c0_2 = arith.constant 0 : index
    %c0_3 = arith.constant 0 : index
    %4 = vector.load %arg5[%c0_2, %c0_3] : memref<384x128xbf16, #tpu.memory_space<vmem>>, vector<384x128xbf16>
    %cst = arith.constant dense<0.000000e+00> : vector<64x128xf32>
    %5 = tpu.matmul %3, %4, %cst {dimension_numbers = #tpu.dot_dimension_numbers<[1], [0], [0], [1], [0, 0, 1, 1], [], []>} : vector<64x384xbf16>, vector<384x128xbf16>, vector<64x128xf32> -> vector<64x128xf32>
    %c0_4 = arith.constant 0 : index
    %c0_5 = arith.constant 0 : index
    %6 = vector.load %arg6[%c0_4, %c0_5] : memref<1x128xf32, #tpu.memory_space<vmem>>, vector<1x128xf32>
    %7 = vector.broadcast %6 : vector<1x128xf32> to vector<64x128xf32>
    %8 = arith.addf %5, %7 : vector<64x128xf32>
    %c0_6 = arith.constant 0 : index
    %c0_7 = arith.constant 0 : index
    %9 = vector.load %arg7[%c0_6, %c0_7] : memref<64x128xf32, #tpu.memory_space<vmem>>, vector<64x128xf32>
    tpu.vector_store %arg7[%c0_6, %c0_7], %8 {strides = array<i32>} : memref<64x128xf32, #tpu.memory_space<vmem>>, vector<64x128xf32>,
    return
  }
  func.func @transform_0(%arg0: i32, %arg1: i32) -> (i32, i32) {
    %c0_i32 = arith.constant 0 : i32
    %c0_i32_0 = arith.constant 0 : i32
    return %arg0, %c0_i32 : i32, i32
  }
  func.func @transform_1(%arg0: i32, %arg1: i32) -> (i32, i32) {
    %c0_i32 = arith.constant 0 : i32
    %c0_i32_0 = arith.constant 0 : i32
    %c0_i32_1 = arith.constant 0 : i32
    return %c0_i32, %c0_i32_0 : i32, i32
  }
  func.func @transform_2(%arg0: i32, %arg1: i32) -> (i32, i32) {
    %c0_i32 = arith.constant 0 : i32
    %c0_i32_0 = arith.constant 0 : i32
    %c0_i32_1 = arith.constant 0 : i32
    return %c0_i32, %c0_i32_0 : i32, i32
  }
  func.func @transform_3(%arg0: i32, %arg1: i32) -> (i32, i32) {
    %c0_i32 = arith.constant 0 : i32
    %c0_i32_0 = arith.constant 0 : i32
    return %c0_i32, %arg1 : i32, i32
  }
  func.func @transform_4(%arg0: i32, %arg1: i32) -> (i32, i32) {
    %c0_i32 = arith.constant 0 : i32
    %c0_i32_0 = arith.constant 0 : i32
    return %c0_i32, %arg1 : i32, i32
  }
  func.func @transform_5(%arg0: i32, %arg1: i32) -> (i32, i32) {
    %c0_i32 = arith.constant 0 : i32
    return %arg0, %arg1 : i32, i32
  }
}

</mosaic_0001>

<bundles_post_ra>
// kernel: tpu_custom_call.1
= control target key start
LH: loop header
LB: loop body
LE: loop exit
PB: predicated region body
PF: predicated region fallthrough
CT: control target
= control target key end

     0   :  { %s3065_s0 = inlined_call_operand.hbm [shape: bf16[192,256], index: 0, kind: input, shape index: {}]   ;;  %s3066_s1 = inlined_call_operand.hbm [shape: bf16[256,384], index: 1, kind: input, shape index: {}]   ;;  %s3067_s2 = inlined_call_operand.vmem [shape: f32[1,384], index: 2, kind: input, shape index: {}]   ;;  %s3068_s3 = inlined_call_operand.hbm [shape: bf16[384,384], index: 3, kind: input, shape index: {}]   ;;  %s3069_s4 = inlined_call_operand.vmem [shape: f32[1,384], index: 4, kind: input, shape index: {}]   ;;  %s3070_s5 = inlined_call_operand.hbm [shape: f32[192,384], index: 5, kind: output, shape index: {}]  }
   0x1   :  { %3089 = sst [smem:[#allocation24_spill]] %s3065_s0 }
   0x2   :  { %3090 = sst [smem:[#allocation25_spill]] %s3067_s2 }
   0x3   :  { %3091 = sst [smem:[#allocation26_spill]] %s3068_s3 }
   0x4   :  { %3092 = sst [smem:[#allocation27_spill]] %s3069_s4 }
   0x5   :  { %3093 = sst [smem:[#allocation28_spill]] %s3070_s5 }
   0x6   :  { %10 = vsyncpa [#allocation4], 0 }
   0x7   :  { %12 = vsyncpa [#allocation4 + $0x1], 0 }
   0x8   :  { %13 = vsyncpa [#allocation7], 0 }
   0x9   :  { %14 = vsyncpa [#allocation5], 0 }
   0xa   :  { %16 = vsyncpa [#allocation5 + $0x1], 0  ;;  %s2504_s18 = smov 0   ;;  %s2506_s19 = smov 0  }
   0xb   :  { %s2508_s20 = smov 0   ;;  %s2510_s21 = smov 0  }
   0xc   :  { %s2512_s22 = smov 0   ;;  %s2514_s23 = smov 0  }
   0xd   :  { %s2516_s24 = smov 0   ;;  %s2518_s25 = smov 0  }
   0xe   :  { %s2520_s26 = smov 0   ;;  %s2522_s27 = smov 0  }
   0xf   :  { %s2524_s28 = smov 0   ;;  %s2526_s29 = smov 0  }
  0x10   :  { %s2528_s30 = smov 0   ;;  %s2530_s6 = smov 0  }
  0x11 LB: > { %3094 = sst [smem:[#allocation14_spill]] %s2427_s23  ;;  %s31_s7 = sadd.s32 1, %s2451_s29  ;;  %s2459_s6 = sphi %s2530_s6, %s22_s6   ;;  %s2455_s30 = sphi %s2528_s30, %s3143_s30   ;;  %s2451_s29 = sphi %s2526_s29, %s3154_s29   ;;  %s2447_s28 = sphi %s2524_s28, %s3153_s28   ;;  %s2443_s27 = sphi %s2522_s27, %s3152_s27   ;;  %s2439_s26 = sphi %s2520_s26, %s3139_s26   ;;  %s2435_s25 = sphi %s2518_s25, %s3151_s25   ;;  %s2431_s24 = sphi %s2516_s24, %s3150_s24   ;;  %s2427_s23 = sphi %s2514_s23, %s3137_s23   ;;  %s2423_s22 = sphi %s2512_s22, %s3149_s22   ;;  %s2419_s21 = sphi %s2510_s21, %s3148_s21   ;;  %s2415_s20 = sphi %s2508_s20, %s3147_s20   ;;  %s2411_s19 = sphi %s2506_s19, %s3146_s19   ;;  %s2407_s18 = sphi %s2504_s18, %s3145_s18  }
  0x12   : > { %3095 = sst [smem:[#allocation15_spill]] %s2439_s26  ;;  %s34_s8 = sadd.s32 1, %s2455_s30 }
  0x13   : > { %3096 = sst [smem:[#allocation16_spill]] %s2443_s27  ;;  %p32_p0 = scmp.ge.s32.totalorder %s31_s7, 3 }
  0x14   : > { %3097 = sst [smem:[#allocation17_spill]] %s2447_s28  ;;  %s41_s9 = sadd.s32 1, %s2439_s26 }
  0x15   : > { %3098 = sst [smem:[#allocation18_spill]] %s2451_s29  ;;  %p48_p1 = scmp.ne.s32.totalorder %s2439_s26, %s2435_s25 }
  0x16   : > { %3099 = sst [smem:[#allocation19_spill]] %s2455_s30  ;;  %p3078_p2 = scmp.eq.s32.totalorder %s2459_s6, 0 }
  0x17   : > { %s3156_s7 = smov (%p32_p0, %s31_s7), 0  ;;  %s3158_s8 = smov (!%p32_p0, %s34_s8), %s2455_s30 }
  0x18   : > { %3100 = sst [smem:[#allocation20_spill]] %s3156_s7  ;;  %p2585_p3 = por %p3078_p2, %p48_p1 }
  0x19   : > { %s2591_s11 = ssub.s32 %s2451_s29, %s3156_s7  ;;  %p36_p4 = scmp.ge.s32.totalorder %s3158_s8, 3 }
  0x1a   : > { %p107_p5 = scmp.eq.s32.totalorder %s2591_s11, 0  ;;  %s163_s12 = sadd.s32 1, %s2415_s20 }
  0x1b   : > { %s3160_s8 = smov (%p36_p4, %s3158_s8), 0  ;;  %p3077_p6 = scmp.lt.s32.totalorder %s2459_s6, 9 }
  0x1c   : > { %3102 = sst [smem:[#allocation21_spill]] %s3160_s8  ;;  %s216_s13 = sand.u32 1, %s2459_s6  }
  0x1d   : > { %s38_s14 = ssub.s32 %s2455_s30, %s3160_s8  ;;  %s218_s16 = sand.u32 1, %s2439_s26  }
  0x1e   : > { %p39_p7 = scmp.eq.s32.totalorder %s38_s14, 0  ;;  %s160_s15 = sor.u32 %s2591_s11, %s38_s14 }
  0x1f   : > { %p161_p8 = scmp.eq.s32.totalorder %s160_s15, 0  ;;  %s1617_s5 = sshll.u32 %s218_s16, 6 }
  0x20   : > { %s2604_s17 = scalar_select %p39_p7, %s2439_s26, %s41_s9  }
  0x21   : > { %s2607_s7 = scalar_select %p161_p8, %s2415_s20, %s163_s12  }
  0x22   : > { %3103 = sst [smem:[#allocation22_spill]] %s2604_s17  ;;  %s1718_s28 = sshll.u32 %s2455_s30, 10 }
  0x23   : > { %s3104_s0 = sld [smem:[#allocation24_spill]]  ;;  %s220_s8 = scalar_lea.vmem [#allocation3], %s1617_s5 }
  0x24   : > { %s228_s3 = sshll.u32 %s220_s8, 4  ;;  %p2619_p9 = pnand %p3077_p6, %p2585_p3  ;;  %s2623_s3 = int_to_ptr.vmem [resolvable:$true] %s228_s3 }
  0x25   : > { %s2625_s12 = scalar_lea.sflag [#allocation4], %s216_s13 }
  0x26   : > { %p2219_p11 = pneg %p2619_p9 }
  0x29   : > { %s2613_s27 = scalar_lea.hbm %s3104_s0, %s1718_s28  ;;  %s2222_s28 = scalar_lea.hbm %s3104_s0, 3072 }
  0x2a   : > { %s2217_s2 = scalar_lea.hbm %s2613_s27, 1024  ;;  %p2223_p0 = scmp.lt.u32.totalorder %s2613_s27, %s3104_s0 }
  0x2b   : > { %p2218_p10 = scmp.ne.s32.totalorder %s2613_s27, %s2217_s2  ;;  %p2224_p1 = scmp.lt.u32.totalorder %s2222_s28, %s2217_s2 }
  0x2c   : > { %p2226_p4 = scmp.lt.u32.totalorder %s2217_s2, %s2613_s27 }
  0x2d   : > { %p2220_p12 = pnand %p2219_p11, %p2218_p10  ;;  %p2225_p3 = por %p2224_p1, %p2223_p0 }
  0x2f   : > { %p2221_p13 = pneg %p2220_p12  ;;  %p2227_p7 = por %p2226_p4, %p2225_p3 }
  0x31   : > { %p2228_p8 = pnand %p2227_p7, %p2221_p13 }
  0x33   : > { %2231 = shalt.err (!%p2228_p8)
}
  0x34   : > { %s2232_s13 = scalar_lea.vmem %s2623_s3, 1024  ;;  %s2461_s14 = smov [#allocation3]  }
  0x35   : > { %p2233_p10 = scmp.ne.s32.totalorder %s2623_s3, %s2232_s13  ;;  %s2237_s15 = sshll.u32 %s2461_s14, 4  ;;  %s2238_s15 = int_to_ptr.vmem [resolvable:$false] %s2237_s15 }
  0x36   : > { %s2239_s16 = scalar_lea.vmem %s2238_s15, 2048  ;;  %p2240_p2 = scmp.lt.s32.totalorder %s2623_s3, %s2238_s15 }
  0x37   : > { %p2235_p12 = pnand %p2233_p10, %p2219_p11  ;;  %p2241_p0 = scmp.lt.s32.totalorder %s2239_s16, %s2232_s13 }
  0x39   : > { %p2236_p6 = pneg %p2235_p12  ;;  %p2242_p1 = por %p2241_p0, %p2240_p2 }
  0x3b   : > { %p2243_p3 = pnand %p2242_p1, %p2236_p6 }
  0x3d   : > { %2246 = shalt.err (!%p2243_p3)
}
  0x3e   : > { %s2462_s2 = smov 128   ;;  %s2463_s4 = smov 8  }
  0x3f   : > { %1951 = dma.hbm_to_vmem [thread:$0]  (!%p2619_p9), %s2613_s27, 1024, %s2623_s3, %s2625_s12, %s2462_s2, %s2462_s2, %s2463_s4  }
  0x40   : > { %s2654_s5 = sadd.s32 4294967295, %s2459_s6   ;;  %s1613_s28 = sadd.s32 4294967294, %s2459_s6  }
  0x41   : > { %p54_p2 = scmp.ne.s32.totalorder %s2435_s25, %s2431_s24  ;;  %p3081_p6 = scmp.eq.s32.totalorder %s2654_s5, 0 }
  0x42   : > { %s109_s8 = sadd.s32 1, %s2427_s23  ;;  %p116_p11 = scmp.ne.s32.totalorder %s2427_s23, %s2423_s22 }
  0x43   : > { %p2665_p13 = por %p3081_p6, %p54_p2  ;;  %p122_p4 = scmp.ne.s32.totalorder %s2423_s22, %s2419_s21 }
  0x44   : > { %s2674_s3 = scalar_select %p107_p5, %s2427_s23, %s109_s8  }
  0x45   : > { %s3106_s10 = scalar_select %p2665_p13, 1, 0 }
  0x46   : > { %3107 = sst [smem:[#allocation23_spill]] %s2674_s3  ;;  %p3108_p9 = scmp.eq.s32.totalorder %s2459_s6, 0 }
  0x47   : > { %p2684_p8 = por %p122_p4, %p3081_p6  ;;  %p173_p10 = scmp.ne.s32.totalorder %s2415_s20, %s2411_s19 }
  0x48   : > { %p2678_p7 = por %p116_p11, %p3108_p9  ;;  %p174_p12 = scmp.eq.s32.totalorder %s2654_s5, 8 }
  0x49   : > { %s3110_s24 = scalar_select %p2684_p8, 1, 0 }
  0x4a   : > { %p179_p0 = scmp.ne.s32.totalorder %s2411_s19, %s2407_s18  ;;  %p180_p5 = scmp.eq.s32.totalorder %s1613_s28, 8 }
  0x4b   : > { %p2693_p1 = por %p174_p12, %p173_p10  ;;  %p1614_p3 = scmp.ge.s32.totalorder %s2459_s6, 1 }
  0x4c   : > { %p2698_p2 = por %p180_p5, %p179_p0  ;;  %p187_p11 = scmp.lt.s32.totalorder %s2459_s6, 10 }
  0x4d   : > { %s3111_s21 = scalar_select %p2693_p1, 1, 0 }
  0x4e   : > { %s3112_s11 = scalar_select %p2698_p2, 1, 0 }
  0x4f   : > { %p2703_p4 = pnand %p1614_p3, %p187_p11  ;;  %s2464_s13 = smov [#allocation6]  }
  0x50   : > { %s199_s14 = sshll.u32 %s2464_s13, 4  ;;  %p3114_p10 = scmp.lt.s32.totalorder %s2459_s6, 9  ;;  %s2707_s14 = int_to_ptr.vmem [resolvable:$true] %s199_s14 }
  0x51   : > { %s3113_s9 = scalar_select %p2703_p4, 1, 0 }
  0x52   : > { %p1944_p9 = pneg %p2703_p4  ;;  %p2715_p12 = pnand %p3114_p10, %p2678_p7 }
  0x53   : > { %s240_s16 = sand.u32 1, %s2427_s23   ;;  %s1621_s28 = sshll.u32 %s2451_s29, 6 }
  0x54   : > { %s3115_s15 = scalar_select %p2715_p12, 1, 0 }
  0x55   : > { %p2722_p0 = pnand %p1944_p9, %p3081_p6  ;;  %s1931_s4 = smul.u32 192, %s240_s16 }
  0x56   : > { %s2247_s0 = scalar_lea.hbm %s3066_s1, 6144 }
  0x57   : > { %p2248_p7 = scmp.ne.s32.totalorder %s3066_s1, %s2247_s0  ;;  %p2249_p5 = pneg %p2722_p0 }
  0x58   : > { %p2254_p9 = scmp.lt.u32.totalorder %s2247_s0, %s3066_s1 }
  0x59   : > { %p2250_p3 = pnand %p2249_p5, %p2248_p7 }
  0x5b   : > { %p2251_p11 = pneg %p2250_p3 }
  0x5d   : > { %p2256_p10 = pnand %p2254_p9, %p2251_p11 }
  0x5f   : > { %2259 = shalt.err (!%p2256_p10)
}
  0x60   : > { %s2260_s16 = scalar_lea.vmem %s2707_s14, 6144  ;;  %p2268_p8 = scmp.lt.s32.totalorder %s2707_s14, %s2707_s14 }
  0x61   : > { %p2261_p6 = scmp.ne.s32.totalorder %s2707_s14, %s2260_s16  ;;  %p2269_p13 = scmp.lt.s32.totalorder %s2260_s16, %s2260_s16 }
  0x63   : > { %p2263_p2 = pnand %p2261_p6, %p2249_p5  ;;  %p2270_p4 = por %p2269_p13, %p2268_p8 }
  0x65   : > { %p2264_p1 = pneg %p2263_p2 }
  0x67   : > { %p2271_p12 = pnand %p2270_p4, %p2264_p1 }
  0x69   : > { %2274 = shalt.err (!%p2271_p12)
}
  0x6a   : > { %s2465_s30 = smov 192   ;;  %s2466_s0 = smov 12  }
  0x6b   : > { %1947 = dma.hbm_to_vmem [thread:$0]  (!%p2722_p0), %s3066_s1, 6144, %s2707_s14, [#allocation7], %s2465_s30, %s2465_s30, %s2466_s0  }
  0x6c   : > { %s3117_s27 = sld [smem:[#allocation26_spill]]  ;;  %s242_s29 = scalar_lea.vmem [#allocation8], %s1931_s4 }
  0x6d   : > { %s248_s23 = sshll.u32 %s242_s29, 4  ;;  %p3119_p13 = scmp.ne.s32.totalorder %s3115_s15, 0  ;;  %s2755_s23 = int_to_ptr.vmem [resolvable:$true] %s248_s23 }
  0x6f   : > { %p2277_p8 = pneg %p3119_p13 }
  0x72   : > { %s3118_s3 = smov %s3117_s27  ;;  %s2753_s16 = scalar_lea.hbm %s3117_s27, %s1621_s28 }
  0x73   : > { %s2275_s2 = scalar_lea.hbm %s2753_s16, 3072  ;;  %s2280_s28 = scalar_lea.hbm %s3118_s3, 9216 }
  0x74   : > { %p2276_p6 = scmp.ne.s32.totalorder %s2753_s16, %s2275_s2  ;;  %p2281_p4 = scmp.lt.u32.totalorder %s2753_s16, %s3118_s3 }
  0x75   : > { %p2282_p12 = scmp.lt.u32.totalorder %s2280_s28, %s2275_s2  ;;  %p2284_p7 = scmp.lt.u32.totalorder %s2275_s2, %s2753_s16 }
  0x76   : > { %p2278_p1 = pnand %p2277_p8, %p2276_p6 }
  0x77   : > { %p2283_p0 = por %p2282_p12, %p2281_p4 }
  0x78   : > { %p2279_p2 = pneg %p2278_p1 }
  0x79   : > { %p2285_p5 = por %p2284_p7, %p2283_p0 }
  0x7b   : > { %p2286_p3 = pnand %p2285_p5, %p2279_p2 }
  0x7d   : > { %2289 = shalt.err (!%p2286_p3)
}
  0x7e   : > { %s2290_s29 = scalar_lea.vmem %s2755_s23, 3072  ;;  %s2467_s4 = smov [#allocation8]  }
  0x7f   : > { %p2291_p11 = scmp.ne.s32.totalorder %s2755_s23, %s2290_s29  ;;  %s2295_s8 = sshll.u32 %s2467_s4, 4  ;;  %s2296_s8 = int_to_ptr.vmem [resolvable:$false] %s2295_s8 }
  0x80   : > { %s2297_s13 = scalar_lea.vmem %s2296_s8, 6144  ;;  %p2298_p6 = scmp.lt.s32.totalorder %s2755_s23, %s2296_s8 }
  0x81   : > { %p2293_p9 = pnand %p2291_p11, %p2277_p8  ;;  %p2299_p1 = scmp.lt.s32.totalorder %s2297_s13, %s2290_s29 }
  0x83   : > { %p2294_p10 = pneg %p2293_p9  ;;  %p2300_p4 = por %p2299_p1, %p2298_p6 }
  0x85   : > { %p2301_p12 = pnand %p2300_p4, %p2294_p10 }
  0x87   : > { %2304 = shalt.err (!%p2301_p12)
}
  0x88   : > { %s2468_s27 = smov 64   ;;  %s2469_s2 = smov 4  }
  0x89   : > { %1954 = dma.hbm_to_vmem [thread:$0]  (!%p3119_p13), %s2753_s16, 3072, %s2755_s23, %s2625_s12, %s2465_s30, %s2468_s27, %s2469_s2  }
  0x8a   : > { %p3120_p8 = scmp.ne.s32.totalorder %s3113_s9, 0 }
  0x8b   : > { %s268_s14 = sand.u32 (!%p3120_p8), 1, %s2654_s5   ;;  %s270_s0 = sand.u32 (!%p3120_p8), 1, %s2435_s25  }
  0x8c   : > { %266 = sbr.rel (%p3120_p8) target bundleno = 772 (0x304), region = 40  ;;  %s1623_s28 = sshll.u32 (!%p3120_p8), %s270_s0, 6 }
  0x8d   : > { %s269_s26 = scalar_lea.sflag (!%p3120_p8), [#allocation4], %s268_s14  ;;  %s2788_s17 = scalar_lea.vmem (!%p3120_p8), [#allocation3], %s1623_s28 }
  0x8e   : > { %p3121_p2 = scmp.ne.s32.totalorder (!%p3120_p8), %s3106_s10, 0 }
  0x93   : > { %2390 = dma.done.wait (%p3121_p2), %s269_s26, 1024  }
  0x94   : > { %2392 = vsyncadd (%p3121_p2), %s269_s26, 4294966272  ;;  %p3122_p0 = scmp.eq.s32.totalorder %s2654_s5, 0 }
  0x96   : > { %2394 = dma.done.wait (%p3122_p0), [#allocation7], 6144   ;;  %p3123_p13 = pmov %p3122_p0 }
  0x97   : > { %s283_s23 = sand.u32 1, %s2423_s22   ;;  %p3124_p7 = scmp.ne.s32.totalorder %s3110_s24, 0 }
  0x98   : > { %2396 = vsyncadd (%p3123_p13), [#allocation7], 4294961152  ;;  %s1932_s12 = smul.u32 192, %s283_s23 }
  0x9a   : > { %s2799_s9 = scalar_lea.vmem [#allocation8], %s1932_s12 }
  0x9b   : > { %2398 = dma.done.wait (%p3124_p7), %s269_s26, 3072  }
  0x9c   : > { %2400 = vsyncadd (%p3124_p7), %s269_s26, 4294964224  ;;  %s3125_s10 = sld [smem:[#allocation16_spill]]  ;;  %s317_s15 = sand.u32 1, %s2411_s19  }
  0x9d   : > { %s1625_s5 = sshll.u32 %s317_s15, 6  ;;  %s3126_s4 = sld [smem:[#allocation27_spill]] }
  0x9e   : > { %s2816_s13 = scalar_lea.vmem [#allocation9], %s1625_s5 }
  0xa2   : > { %p321_p5 = scmp.lt.s32.totalorder %s3125_s10, 2  ;;  %p1626_p3 = scmp.ne.s32.totalorder %s3125_s10, 0 }
  0xa3   : > { %v2085_v0 = vld [vmem:[#allocation6 + $0xc0] ss:$12 sps:$4 sm:$0xff] (!%p1626_p3)   ;;  %v2086_v1 = vld [vmem:[#allocation6 + $0xc4] ss:$12 sps:$4 sm:$0xff] (!%p1626_p3)   ;;  %v2090_v5 = vld [vmem:[#allocation6 + $0xdc] ss:$12 sps:$4 sm:$0xff] (!%p1626_p3)  }
  0xa4   : > { %s2810_s30 = scalar_select %p321_p5, %s3125_s10, 2 }
  0xa5   : > { %329 = sbr.rel (%p1626_p3) target bundleno = 478 (0x1de), region = 56  ;;  %1719 = vmatprep.subr.bf16.mxu0 (!%p1626_p3), %v2085_v0  ;;  %v2087_v2 = vld [vmem:[#allocation6] ss:$12 sps:$4 sm:$0xff] (!%p1626_p3)   ;;  %1759 = vmatprep.subr.bf16.mxu1 (!%p1626_p3), %v2086_v1  ;;  %v2088_v3 = vld [vmem:[#allocation6 + $0x4] ss:$12 sps:$4 sm:$0xff] (!%p1626_p3)   ;;  %s3127_s2 = sld [smem:[#allocation25_spill]] (!%p1626_p3) }
  0xa6   : > { %s323_s8 = scalar_lea.vmem %s3126_s4, %s2810_s30  ;;  %1720 = vmatpush3.bf16.msra.mxu0 (!%p1626_p3), %v2087_v2  ;;  %v2089_v4 = vld [vmem:[#allocation6 + $0xd8] ss:$12 sps:$4 sm:$0xff] (!%p1626_p3)   ;;  %1760 = vmatpush3.bf16.msra.mxu1 (!%p1626_p3), %v2088_v3  ;;  %v2092_v7 = vld [vmem:[#allocation6 + $0x1c] ss:$12 sps:$4 sm:$0xff] (!%p1626_p3)   ;;  %v2094_v9 = vld [vmem:[#allocation6 + $0xf4] ss:$12 sps:$4 sm:$0xff] (!%p1626_p3)  }
  0xa7   : > { %1721 = vmatprep.subr.bf16.mxu0 (!%p1626_p3), %v2089_v4  ;;  %v2091_v6 = vld [vmem:[#allocation6 + $0x18] ss:$12 sps:$4 sm:$0xff] (!%p1626_p3)   ;;  %1761 = vmatprep.subr.bf16.mxu1 (!%p1626_p3), %v2090_v5  ;;  %v2093_v8 = vld [vmem:[#allocation6 + $0xf0] ss:$12 sps:$4 sm:$0xff] (!%p1626_p3)   ;;  %v2096_v11 = vld [vmem:[#allocation6 + $0x34] ss:$12 sps:$4 sm:$0xff] (!%p1626_p3)  }
  0xa8   : > { %v2095_v10 = vld [vmem:[#allocation6 + $0x30] ss:$12 sps:$4 sm:$0xff] (!%p1626_p3)   ;;  %v2097_v12 = vld [vmem:[#allocation6 + $0x108] ss:$12 sps:$4 sm:$0xff] (!%p1626_p3)   ;;  %v2098_v13 = vld [vmem:[#allocation6 + $0x10c] ss:$12 sps:$4 sm:$0xff] (!%p1626_p3)  }
  0xa9   : > { %v2099_v14 = vld [vmem:[#allocation6 + $0x48] ss:$12 sps:$4 sm:$0xff] (!%p1626_p3)   ;;  %v2100_v15 = vld [vmem:[#allocation6 + $0x4c] ss:$12 sps:$4 sm:$0xff] (!%p1626_p3)   ;;  %v2102_v17 = vld [vmem:[#allocation6 + $0x124] ss:$12 sps:$4 sm:$0xff] (!%p1626_p3)  }
  0xaa   : > { %1722 = vmatpush3.bf16.msra.mxu0 (!%p1626_p3), %v2091_v6  ;;  %1762 = vmatpush3.bf16.msra.mxu1 (!%p1626_p3), %v2092_v7  ;;  %v2101_v16 = vld [vmem:[#allocation6 + $0x120] ss:$12 sps:$4 sm:$0xff] (!%p1626_p3)   ;;  %v2104_v19 = vld [vmem:[#allocation6 + $0x64] ss:$12 sps:$4 sm:$0xff] (!%p1626_p3)   ;;  %v2106_v21 = vld [vmem:[#allocation6 + $0x13c] ss:$12 sps:$4 sm:$0xff] (!%p1626_p3)  }
  0xab   : > { %1723 = vmatprep.subr.bf16.mxu0 (!%p1626_p3), %v2093_v8  ;;  %1763 = vmatprep.subr.bf16.mxu1 (!%p1626_p3), %v2094_v9  ;;  %v2103_v18 = vld [vmem:[#allocation6 + $0x60] ss:$12 sps:$4 sm:$0xff] (!%p1626_p3)   ;;  %v2105_v20 = vld [vmem:[#allocation6 + $0x138] ss:$12 sps:$4 sm:$0xff] (!%p1626_p3)   ;;  %v2108_v23 = vld [vmem:[#allocation6 + $0x7c] ss:$12 sps:$4 sm:$0xff] (!%p1626_p3)  }
  0xac   : > { %v2107_v22 = vld [vmem:[#allocation6 + $0x78] ss:$12 sps:$4 sm:$0xff]   ;;  %v2109_v24 = vld [vmem:[#allocation6 + $0x150] ss:$12 sps:$4 sm:$0xff]   ;;  %v2110_v25 = vld [vmem:[#allocation6 + $0x154] ss:$12 sps:$4 sm:$0xff]  }
  0xad   : > { %v2111_v26 = vld [vmem:[#allocation6 + $0x90] ss:$12 sps:$4 sm:$0xff]   ;;  %v2112_v27 = vld [vmem:[#allocation6 + $0x94] ss:$12 sps:$4 sm:$0xff]   ;;  %v2114_v29 = vld [vmem:[#allocation6 + $0x16c] ss:$12 sps:$4 sm:$0xff]  }
  0xae   : > { %1724 = vmatpush3.bf16.msra.mxu0 %v2095_v10  ;;  %1764 = vmatpush3.bf16.msra.mxu1 %v2096_v11  ;;  %v2113_v28 = vld [vmem:[#allocation6 + $0x168] ss:$12 sps:$4 sm:$0xff]   ;;  %v2116_v31 = vld [vmem:[#allocation6 + $0xac] ss:$12 sps:$4 sm:$0xff]   ;;  %v2129_v42 = vld [vmem:[#allocation6 + $0x110] ss:$12 sps:$4 sm:$0xff]  }
  0xaf   : > { %1725 = vmatprep.subr.bf16.mxu0 %v2097_v12  ;;  %1765 = vmatprep.subr.bf16.mxu1 %v2098_v13  ;;  %v2115_v30 = vld [vmem:[#allocation6 + $0xa8] ss:$12 sps:$4 sm:$0xff]   ;;  %v2820_v32 = vld [vmem:[%s2788_s17 + $0x4] ss:$8 sps:$4 sm:$0xff]   ;;  %v2126_v39 = vld [vmem:[%s2788_s17 + $0x10] ss:$8 sps:$4 sm:$0xff]  }
  0xb0   : > { %v2823_v33 = vld [vmem:[%s2788_s17] ss:$8 sps:$4 sm:$0xff]   ;;  %545 = vmatprep.mubr.bf16.mxu0 %v2820_v32  ;;  %793 = vmatprep.mubr.bf16.mxu1 %v2820_v32  ;;  %v2124_v38 = vld [vmem:[%s2788_s17 + $0x14] ss:$8 sps:$4 sm:$0xff]   ;;  %v2127_v40 = vld [vmem:[#allocation6 + $0xf8] ss:$12 sps:$4 sm:$0xff]  }
  0xb1   : > { %v2120_v34 = vld [vmem:[#allocation6 + $0xc8] ss:$12 sps:$4 sm:$0xff]   ;;  %v2122_v36 = vld [vmem:[#allocation6 + $0xe0] ss:$12 sps:$4 sm:$0xff]   ;;  %v2128_v41 = vld [vmem:[#allocation6 + $0x38] ss:$12 sps:$4 sm:$0xff]  }
  0xb2   : > { %1726 = vmatpush3.bf16.msra.mxu0 %v2099_v14  ;;  %1766 = vmatpush3.bf16.msra.mxu1 %v2100_v15  ;;  %v2121_v35 = vld [vmem:[#allocation6 + $0x8] ss:$12 sps:$4 sm:$0xff]   ;;  %v2123_v37 = vld [vmem:[#allocation6 + $0x20] ss:$12 sps:$4 sm:$0xff]   ;;  %v2130_v44 = vld [vmem:[#allocation6 + $0x50] ss:$12 sps:$4 sm:$0xff]  }
  0xb3   : > { %1727 = vmatprep.subr.bf16.mxu0 %v2101_v16  ;;  %1767 = vmatprep.subr.bf16.mxu1 %v2102_v17  ;;  %v2131_v43 = vld [vmem:[%s2788_s17 + $0x24] ss:$8 sps:$4 sm:$0xff]   ;;  %v2134_v45 = vld [vmem:[#allocation6 + $0x128] ss:$12 sps:$4 sm:$0xff]   ;;  %v2140_v52 = vld [vmem:[%s2788_s17 + $0x30] ss:$8 sps:$4 sm:$0xff]  }
  0xb4   : > { %v2133_v46 = vld [vmem:[%s2788_s17 + $0x20] ss:$8 sps:$4 sm:$0xff]   ;;  %v2138_v47 = vld [vmem:[%s2788_s17 + $0x34] ss:$8 sps:$4 sm:$0xff]   ;;  %v2141_v51 = vld [vmem:[#allocation6 + $0x158] ss:$12 sps:$4 sm:$0xff]  }
  0xb5   : > { %v2135_v48 = vld [vmem:[#allocation6 + $0x68] ss:$12 sps:$4 sm:$0xff]   ;;  %v2136_v49 = vld [vmem:[#allocation6 + $0x140] ss:$12 sps:$4 sm:$0xff]   ;;  %v2142_v53 = vld [vmem:[#allocation6 + $0x98] ss:$12 sps:$4 sm:$0xff]  }
  0xb6   : > { %1728 = vmatpush3.bf16.msra.mxu0 %v2103_v18  ;;  %1768 = vmatpush3.bf16.msra.mxu1 %v2104_v19  ;;  %v2137_v50 = vld [vmem:[#allocation6 + $0x80] ss:$12 sps:$4 sm:$0xff]   ;;  %v2143_v54 = vld [vmem:[#allocation6 + $0x170] ss:$12 sps:$4 sm:$0xff]  }
  0xb7   : > { %1729 = vmatprep.subr.bf16.mxu0 %v2105_v20  ;;  %1769 = vmatprep.subr.bf16.mxu1 %v2106_v21  ;;  %v2144_v55 = vld [vmem:[#allocation6 + $0xb0] ss:$12 sps:$4 sm:$0xff]   ;;  %v2840_v58 = vld [vmem:[%s3127_s2] ss:$0 sm:$0xff]  ;;  %v2845_v61 = vld [vmem:[%s3127_s2 + $0x1] ss:$0 sm:$0xff] }
  0xba   : > { %1730 = vmatpush3.bf16.msra.mxu0 %v2107_v22  ;;  %1770 = vmatpush3.bf16.msra.mxu1 %v2108_v23 }
  0xbb   : > { %1731 = vmatprep.subr.bf16.mxu0 %v2109_v24  ;;  %1771 = vmatprep.subr.bf16.mxu1 %v2110_v25 }
  0xbe   : > { %1732 = vmatpush3.bf16.msra.mxu0 %v2111_v26  ;;  %1772 = vmatpush3.bf16.msra.mxu1 %v2112_v27 }
  0xbf   : > { %1733 = vmatprep.subr.bf16.mxu0 %v2113_v28  ;;  %1773 = vmatprep.subr.bf16.mxu1 %v2114_v29 }
  0xc2   : > { %1734 = vmatpush3.bf16.msra.mxu0 %v2115_v30  ;;  %1774 = vmatpush3.bf16.msra.mxu1 %v2116_v31 }
  0xc3   : > { %1799 = vmatprep.subr.bf16.mxu0 %v2120_v34  ;;  %1915 = vmatprep.subr.bf16.mxu1 %v2120_v34 }
  0xc5   : > { %546 = vmatmul.mubr.bf16.vlgmr.msra.gmra.mrb[0].mxu0 %v2823_v33  ;;  %794 = vmatmul.mubr.bf16.vlgmr.msra.gmra.mrb[0].mxu1 %v2823_v33 }
  0xc6   : > { %1800 = vmatpush3.bf16.msra.mxu0 %v2121_v35  ;;  %1923 = vmatpush3.bf16.msra.mxu1 %v2121_v35 }
  0xc7   : > { %1801 = vmatprep.subr.bf16.mxu0 %v2122_v36  ;;  %1916 = vmatprep.subr.bf16.mxu1 %v2122_v36 }
  0xc8   : > { %553 = vmatprep.mubr.bf16.mxu0 %v2124_v38  ;;  %801 = vmatprep.mubr.bf16.mxu1 %v2124_v38 }
  0xca   : > { %1802 = vmatpush3.bf16.msra.mxu0 %v2123_v37  ;;  %1924 = vmatpush3.bf16.msra.mxu1 %v2123_v37 }
  0xcb   : > { %1803 = vmatprep.subr.bf16.mxu0 %v2127_v40  ;;  %1917 = vmatprep.subr.bf16.mxu1 %v2127_v40 }
  0xcd   : > { %554 = vmatmul.mubr.bf16.gmra.mrb[4].mxu0 %v2126_v39  ;;  %802 = vmatmul.mubr.bf16.gmra.mrb[4].mxu1 %v2126_v39 }
  0xce   : > { %1804 = vmatpush3.bf16.msra.mxu0 %v2128_v41  ;;  %561 = vmatprep.mubr.bf16.mxu0 %v2131_v43 }
  0xcf   : > { %1925 = vmatpush3.bf16.msra.mxu1 %v2128_v41  ;;  %1805 = vmatprep.subr.bf16.mxu0 %v2129_v42 }
  0xd0   : > { %1918 = vmatprep.subr.bf16.mxu1 %v2129_v42  ;;  %809 = vmatprep.mubr.bf16.mxu1 %v2131_v43 }
  0xd2   : > { %1806 = vmatpush3.bf16.msra.mxu0 %v2130_v44 }
  0xd3   : > { %1926 = vmatpush3.bf16.msra.mxu1 %v2130_v44  ;;  %1807 = vmatprep.subr.bf16.mxu0 %v2134_v45 }
  0xd4   : > { %1919 = vmatprep.subr.bf16.mxu1 %v2134_v45 }
  0xd5   : > { %562 = vmatmul.mubr.bf16.gmra.mrb[8].mxu0 %v2133_v46  ;;  %810 = vmatmul.mubr.bf16.gmra.mrb[8].mxu1 %v2133_v46 }
  0xd6   : > { %569 = vmatprep.mubr.bf16.mxu0 %v2138_v47  ;;  %1808 = vmatpush3.bf16.msra.mxu0 %v2135_v48 }
  0xd7   : > { %817 = vmatprep.mubr.bf16.mxu1 %v2138_v47  ;;  %1927 = vmatpush3.bf16.msra.mxu1 %v2135_v48 }
  0xd8   : > { %1809 = vmatprep.subr.bf16.mxu0 %v2136_v49  ;;  %1920 = vmatprep.subr.bf16.mxu1 %v2136_v49 }
  0xda   : > { %1810 = vmatpush3.bf16.msra.mxu0 %v2137_v50 }
  0xdb   : > { %1928 = vmatpush3.bf16.msra.mxu1 %v2137_v50  ;;  %1811 = vmatprep.subr.bf16.mxu0 %v2141_v51 }
  0xdc   : > { %1921 = vmatprep.subr.bf16.mxu1 %v2141_v51 }
  0xdd   : > { %570 = vmatmul.mubr.bf16.gmra.mrb[12].mxu0 %v2140_v52  ;;  %818 = vmatmul.mubr.bf16.gmra.mrb[12].mxu1 %v2140_v52 }
  0xde   : > { %1041 = vmatprep.mubr.bf16.mxu0 %v2820_v32  ;;  %1812 = vmatpush3.bf16.msra.mxu0 %v2142_v53 }
  0xdf   : > { %1057 = vmatprep.mubr.bf16.mxu1 %v2131_v43  ;;  %1929 = vmatpush3.bf16.msra.mxu1 %v2142_v53 }
  0xe0   : > { %1813 = vmatprep.subr.bf16.mxu0 %v2143_v54  ;;  %1922 = vmatprep.subr.bf16.mxu1 %v2143_v54 }
  0xe2   : > { %1814 = vmatpush3.bf16.msra.mxu0 %v2144_v55 }
  0xe3   : > { %1930 = vmatpush3.bf16.msra.mxu1 %v2144_v55 }
  0xe5   : > { %1042 = vmatmul.mubr.bf16.vlgmr.msra.gmra.mrb[16].mxu0 %v2823_v33 }
  0xe6   : > { %1058 = vmatmul.mubr.bf16.vlgmr.msra.gmra.mrb[16].mxu1 %v2133_v46  ;;  %1049 = vmatprep.mubr.bf16.mxu0 %v2124_v38 }
  0xe7   : > { %1065 = vmatprep.mubr.bf16.mxu1 %v2138_v47 }
  0xed   : > { %1050 = vmatmul.mubr.bf16.gmra.mrb[20].mxu0 %v2126_v39 }
  0xee   : > { %1066 = vmatmul.mubr.bf16.gmra.mrb[20].mxu1 %v2140_v52 }
 0x198   : > { %v1735_v56 = vpop.f32.mrb[0].mxu0  ;;  %v1775_v57 = vpop.f32.mrb[0].mxu1 }
 0x199   : > { %v1736_v59 = vpop.f32.mrb[1].mxu0  ;;  %v1776_v62 = vpop.f32.mrb[1].mxu1 }
 0x19a   : > { %v1737_v60 = vadd.f32 %v1736_v59, %v1735_v56  ;;  %v1738_v63 = vpop.f32.mrb[2].mxu0  ;;  %v1777_v0 = vadd.f32 %v1776_v62, %v1775_v57  ;;  %v1778_v1 = vpop.f32.mrb[2].mxu1 }
 0x19b   : > { %v1739_v2 = vpop.f32.mrb[3].mxu0  ;;  %v1779_v5 = vpop.f32.mrb[3].mxu1 }
 0x19c   : > { %v548_v3 = vadd.f32 %v1737_v60, %v2840_v58  ;;  %v1740_v4 = vadd.f32 %v1739_v2, %v1738_v63  ;;  %v796_v6 = vadd.f32 %v1777_v0, %v2845_v61  ;;  %v1780_v7 = vadd.f32 %v1779_v5, %v1778_v1 }
 0x19e   : > { %v586_v8 = vmul.f32 0.70710677, %v548_v3  ;;  %v551_v9 = vadd.f32 %v1740_v4, %v2840_v58  ;;  %v834_v10 = vmul.f32 0.70710677, %v796_v6  ;;  %v799_v11 = vadd.f32 %v1780_v7, %v2845_v61 }
 0x19f   : > { %v578_v47 = vmul.f32 0.5, %v548_v3  ;;  %v826_v57 = vmul.f32 0.5, %v796_v6 }
 0x1a0   : > { %2145 = verf.f32 %v586_v8  ;;  %v587_v12 = vmul.f32 0.70710677, %v551_v9  ;;  %v1741_v13 = vpop.f32.mrb[4].mxu0  ;;  %v835_v14 = vmul.f32 0.70710677, %v799_v11  ;;  %v1781_v15 = vpop.f32.mrb[4].mxu1 }
 0x1a1   : > { %2147 = verf.f32 %v834_v10  ;;  %v1742_v16 = vpop.f32.mrb[5].mxu0  ;;  %v1782_v18 = vpop.f32.mrb[5].mxu1  ;;  %v579_v53 = vmul.f32 0.5, %v551_v9  ;;  %v827_v59 = vmul.f32 0.5, %v799_v11 }
 0x1a2   : > { %2149 = verf.f32 %v587_v12  ;;  %v1743_v17 = vadd.f32 %v1742_v16, %v1741_v13  ;;  %v1744_v19 = vpop.f32.mrb[6].mxu0  ;;  %v1783_v20 = vadd.f32 %v1782_v18, %v1781_v15  ;;  %v1784_v21 = vpop.f32.mrb[6].mxu1 }
 0x1a3   : > { %2151 = verf.f32 %v835_v14  ;;  %v1745_v22 = vpop.f32.mrb[7].mxu0  ;;  %v1785_v25 = vpop.f32.mrb[7].mxu1 }
 0x1a4   : > { %v2852_v23 = vadd.f32 %v1743_v17, %v2840_v58  ;;  %v1746_v24 = vadd.f32 %v1745_v22, %v1744_v19  ;;  %v2855_v26 = vadd.f32 %v1783_v20, %v2845_v61  ;;  %v1786_v27 = vadd.f32 %v1785_v25, %v1784_v21 }
 0x1a6   : > { %v588_v28 = vmul.f32 0.70710677, %v2852_v23  ;;  %v2859_v29 = vadd.f32 %v1746_v24, %v2840_v58  ;;  %v836_v30 = vmul.f32 0.70710677, %v2855_v26  ;;  %v2863_v31 = vadd.f32 %v1786_v27, %v2845_v61 }
 0x1a7   : > { %v580_v18 = vmul.f32 0.5, %v2852_v23 }
 0x1a8   : > { %2153 = verf.f32 %v588_v28  ;;  %v589_v32 = vmul.f32 0.70710677, %v2859_v29  ;;  %v1747_v33 = vpop.f32.mrb[8].mxu0  ;;  %v837_v34 = vmul.f32 0.70710677, %v2863_v31  ;;  %v1787_v35 = vpop.f32.mrb[8].mxu1 }
 0x1a9   : > { %2155 = verf.f32 %v836_v30  ;;  %v1748_v36 = vpop.f32.mrb[9].mxu0  ;;  %v1788_v39 = vpop.f32.mrb[9].mxu1 }
 0x1aa   : > { %v2146_v37 = vpop.eup %2145  ;;  %2157 = verf.f32 %v589_v32  ;;  %v1749_v38 = vadd.f32 %v1748_v36, %v1747_v33  ;;  %v1750_v40 = vpop.f32.mrb[10].mxu0  ;;  %v1789_v43 = vadd.f32 %v1788_v39, %v1787_v35  ;;  %v581_v33 = vmul.f32 0.5, %v2859_v29 }
 0x1ab   : > { %v2148_v41 = vpop.eup %2147  ;;  %v602_v42 = vadd.f32 1.0, %v2146_v37  ;;  %2159 = verf.f32 %v837_v34  ;;  %v1790_v44 = vpop.f32.mrb[10].mxu1  ;;  %v828_v36 = vmul.f32 0.5, %v2855_v26  ;;  %v829_v37 = vmul.f32 0.5, %v2863_v31 }
 0x1ac   : > { %v1751_v45 = vpop.f32.mrb[11].mxu0  ;;  %v2150_v46 = vpop.eup %2149  ;;  %v850_v48 = vadd.f32 1.0, %v2148_v41  ;;  %v2868_v49 = vadd.f32 %v1749_v38, %v2840_v58  ;;  %v2871_v55 = vadd.f32 %v1789_v43, %v2845_v61 }
 0x1ad   : > { %v1752_v50 = vadd.f32 %v1751_v45, %v1750_v40  ;;  %v1791_v51 = vpop.f32.mrb[11].mxu1  ;;  %v2152_v52 = vpop.eup %2151  ;;  %v603_v54 = vadd.f32 1.0, %v2150_v46  ;;  %v610_v63 = vmul.f32 %v602_v42, %v578_v47 }
 0x1ae   : > { %v1792_v56 = vadd.f32 %v1791_v51, %v1790_v44  ;;  %v851_v60 = vadd.f32 1.0, %v2152_v52  ;;  %v590_v62 = vmul.f32 0.70710677, %v2868_v49  ;;  %v838_v1 = vmul.f32 0.70710677, %v2871_v55 }
 0x1af   : > { %v611_v0 = vmul.f32 %v603_v54, %v579_v53  ;;  %v2876_v2 = vadd.f32 %v1752_v50, %v2840_v58  ;;  %v858_v3 = vmul.f32 %v850_v48, %v826_v57  ;;  %v582_v57 = vmul.f32 0.5, %v2868_v49 }
 0x1b0   : > { %v859_v4 = vmul.f32 %v851_v60, %v827_v59  ;;  %2161 = verf.f32 %v590_v62  ;;  %v2879_v5 = vadd.f32 %v1792_v56, %v2845_v61  ;;  %v1753_v7 = vpop.f32.mrb[12].mxu0  ;;  %v1793_v9 = vpop.f32.mrb[12].mxu1 }
 0x1b1   : > { %v618_v8 = vpack.c.bf16 %v611_v0, %v610_v63  ;;  %2163 = verf.f32 %v838_v1  ;;  %v591_v6 = vmul.f32 0.70710677, %v2876_v2  ;;  %v1754_v10 = vpop.f32.mrb[13].mxu0  ;;  %v1794_v15 = vpop.f32.mrb[13].mxu1  ;;  %v830_v1 = vmul.f32 0.5, %v2871_v55 }
 0x1b2   : > { %v2154_v11 = vpop.eup %2153  ;;  %v866_v12 = vpack.c.bf16 %v859_v4, %v858_v3  ;;  %v839_v13 = vmul.f32 0.70710677, %v2879_v5  ;;  %v1755_v14 = vadd.f32 %v1754_v10, %v1753_v7  ;;  %v1756_v16 = vpop.f32.mrb[14].mxu0  ;;  %v1795_v20 = vadd.f32 %v1794_v15, %v1793_v9 }
 0x1b3   : > { %v2156_v17 = vpop.eup %2155  ;;  %622 = vst [vmem:[#allocation2] sm:$0xff] %v618_v8  ;;  %v604_v19 = vadd.f32 1.0, %v2154_v11  ;;  %2165 = verf.f32 %v591_v6  ;;  %v1796_v21 = vpop.f32.mrb[14].mxu1  ;;  %v583_v9 = vmul.f32 0.5, %v2876_v2 }
 0x1b4   : > { %v1757_v22 = vpop.f32.mrb[15].mxu0  ;;  %v2158_v24 = vpop.eup %2157  ;;  %870 = vst [vmem:[#allocation2 + $0x8] sm:$0xff] %v866_v12  ;;  %v852_v25 = vadd.f32 1.0, %v2156_v17  ;;  %2167 = verf.f32 %v839_v13  ;;  %v2885_v27 = vadd.f32 %v1755_v14, %v2840_v58  ;;  %v2889_v23 = vadd.f32 %v1795_v20, %v2845_v61 }
 0x1b5   : > { %v1758_v28 = vadd.f32 %v1757_v22, %v1756_v16  ;;  %v1797_v30 = vpop.f32.mrb[15].mxu1  ;;  %v2160_v32 = vpop.eup %2159  ;;  %v605_v34 = vadd.f32 1.0, %v2158_v24  ;;  %v612_v40 = vmul.f32 %v604_v19, %v580_v18  ;;  %v831_v12 = vmul.f32 0.5, %v2879_v5 }
 0x1b6   : > { %v1798_v35 = vadd.f32 %v1797_v30, %v1796_v21  ;;  %v853_v38 = vadd.f32 1.0, %v2160_v32  ;;  %v592_v39 = vmul.f32 0.70710677, %v2885_v27  ;;  %v840_v42 = vmul.f32 0.70710677, %v2889_v23 }
 0x1b7   : > { %v613_v41 = vmul.f32 %v605_v34, %v581_v33  ;;  %v2896_v43 = vadd.f32 %v1758_v28, %v2840_v58  ;;  %v860_v29 = vmul.f32 %v852_v25, %v828_v36  ;;  %v2906_v58 = vld [vmem:[%s3127_s2 + $0x2] ss:$0 sm:$0xff]  ;;  %v584_v36 = vmul.f32 0.5, %v2885_v27 }
 0x1b8   : > { %v861_v44 = vmul.f32 %v853_v38, %v829_v37  ;;  %2169 = verf.f32 %v592_v39  ;;  %v2899_v45 = vadd.f32 %v1798_v35, %v2845_v61  ;;  %v1815_v31 = vpop.f32.mrb[16].mxu0 }
 0x1b9   : > { %v619_v46 = vpack.c.bf16 %v613_v41, %v612_v40  ;;  %2171 = verf.f32 %v840_v42  ;;  %v593_v26 = vmul.f32 0.70710677, %v2896_v43  ;;  %v1827_v51 = vpop.f32.mrb[16].mxu1  ;;  %v1816_v52 = vpop.f32.mrb[17].mxu0  ;;  %v832_v42 = vmul.f32 0.5, %v2889_v23 }
 0x1ba   : > { %v2162_v47 = vpop.eup %2161  ;;  %v867_v48 = vpack.c.bf16 %v861_v44, %v860_v29  ;;  %v841_v50 = vmul.f32 0.70710677, %v2899_v45  ;;  %v1817_v61 = vadd.f32 %v1816_v52, %v1815_v31  ;;  %v1828_v54 = vpop.f32.mrb[17].mxu1 }
 0x1bb   : > { %v2164_v53 = vpop.eup %2163  ;;  %623 = vst [vmem:[#allocation2 + $0x18] sm:$0xff] %v619_v46  ;;  %2173 = verf.f32 %v593_v26  ;;  %v1818_v56 = vpop.f32.mrb[18].mxu0  ;;  %v606_v59 = vadd.f32 1.0, %v2162_v47  ;;  %v1829_v60 = vadd.f32 %v1828_v54, %v1827_v51  ;;  %v585_v47 = vmul.f32 0.5, %v2896_v43 }
 0x1bc   : > { %871 = vst [vmem:[#allocation2 + $0x20] sm:$0xff] %v867_v48  ;;  %2175 = verf.f32 %v841_v50  ;;  %v1830_v62 = vpop.f32.mrb[18].mxu1  ;;  %v1819_v63 = vpop.f32.mrb[19].mxu0  ;;  %v854_v3 = vadd.f32 1.0, %v2164_v53  ;;  %v2911_v4 = vadd.f32 %v1817_v61, %v2906_v58  ;;  %v833_v51 = vmul.f32 0.5, %v2899_v45 }
 0x1bd   : > { %v2166_v0 = vpop.eup %2165  ;;  %v1820_v7 = vadd.f32 %v1819_v63, %v1818_v56  ;;  %v1831_v8 = vpop.f32.mrb[19].mxu1  ;;  %v2915_v49 = vadd.f32 %v1829_v60, %v2906_v58  ;;  %v614_v15 = vmul.f32 %v606_v59, %v582_v57 }
 0x1be   : > { %v2168_v6 = vpop.eup %2167  ;;  %v607_v10 = vadd.f32 1.0, %v2166_v0  ;;  %v1832_v11 = vadd.f32 %v1831_v8, %v1830_v62  ;;  %v1082_v14 = vmul.f32 0.70710677, %v2911_v4  ;;  %v862_v2 = vmul.f32 %v854_v3, %v830_v1 }
 0x1bf   : > { %v855_v13 = vadd.f32 1.0, %v2168_v6  ;;  %v2920_v55 = vadd.f32 %v1820_v7, %v2906_v58  ;;  %v1086_v17 = vmul.f32 0.70710677, %v2915_v49 }
 0x1c0   : > { %v615_v16 = vmul.f32 %v607_v10, %v583_v9  ;;  %v2924_v18 = vadd.f32 %v1832_v11, %v2906_v58  ;;  %2177 = verf.f32 %v1082_v14  ;;  %v1821_v21 = vpop.f32.mrb[20].mxu0  ;;  %v1078_v11 = vmul.f32 0.5, %v2915_v49 }
 0x1c1   : > { %v863_v19 = vmul.f32 %v855_v13, %v831_v12  ;;  %v1083_v20 = vmul.f32 0.70710677, %v2920_v55  ;;  %2179 = verf.f32 %v1086_v17  ;;  %v1833_v25 = vpop.f32.mrb[20].mxu1  ;;  %v1822_v28 = vpop.f32.mrb[21].mxu0  ;;  %v1075_v9 = vmul.f32 0.5, %v2920_v55 }
 0x1c2   : > { %v2170_v5 = vpop.eup %2169  ;;  %v620_v22 = vpack.c.bf16 %v615_v16, %v614_v15  ;;  %v1087_v24 = vmul.f32 0.70710677, %v2924_v18  ;;  %v1823_v33 = vadd.f32 %v1822_v28, %v1821_v21  ;;  %v1834_v34 = vpop.f32.mrb[21].mxu1  ;;  %v1079_v12 = vmul.f32 0.5, %v2924_v18 }
 0x1c3   : > { %v2172_v30 = vpop.eup %2171  ;;  %v868_v32 = vpack.c.bf16 %v863_v19, %v862_v2  ;;  %2181 = verf.f32 %v1083_v20  ;;  %v1824_v35 = vpop.f32.mrb[22].mxu0  ;;  %v608_v37 = vadd.f32 1.0, %v2170_v5  ;;  %v1835_v38 = vadd.f32 %v1834_v34, %v1833_v25 }
 0x1c4   : > { %624 = vst [vmem:[#allocation2 + $0x30] sm:$0xff] %v620_v22  ;;  %2183 = verf.f32 %v1087_v24  ;;  %v1836_v39 = vpop.f32.mrb[22].mxu1  ;;  %v1825_v40 = vpop.f32.mrb[23].mxu0  ;;  %v856_v29 = vadd.f32 1.0, %v2172_v30  ;;  %v1052_v44 = vadd.f32 %v1823_v33, %v2906_v58 }
 0x1c5   : > { %v2174_v41 = vpop.eup %2173  ;;  %872 = vst [vmem:[#allocation2 + $0x38] sm:$0xff] %v868_v32  ;;  %v1826_v46 = vadd.f32 %v1825_v40, %v1824_v35  ;;  %v1837_v26 = vpop.f32.mrb[23].mxu1  ;;  %v1068_v27 = vadd.f32 %v1835_v38, %v2906_v58  ;;  %v616_v54 = vmul.f32 %v608_v37, %v584_v36 }
 0x1c6   : > { %v2176_v31 = vpop.eup %2175  ;;  %v609_v48 = vadd.f32 1.0, %v2174_v41  ;;  %v1838_v50 = vadd.f32 %v1837_v26, %v1836_v39  ;;  %v1084_v53 = vmul.f32 0.70710677, %v1052_v44  ;;  %v864_v59 = vmul.f32 %v856_v29, %v832_v42 }
 0x1c7   : > { %v857_v52 = vadd.f32 1.0, %v2176_v31  ;;  %v1055_v61 = vadd.f32 %v1826_v46, %v2906_v58  ;;  %v1088_v56 = vmul.f32 0.70710677, %v1068_v27  ;;  %v1076_v24 = vmul.f32 0.5, %v1052_v44 }
 0x1c8   : > { %v617_v23 = vmul.f32 %v609_v48, %v585_v47  ;;  %v1071_v57 = vadd.f32 %v1838_v50, %v2906_v58  ;;  %2185 = verf.f32 %v1084_v53  ;;  %v1074_v58 = vmul.f32 0.5, %v2911_v4 }
 0x1c9   : > { %v865_v60 = vmul.f32 %v857_v52, %v833_v51  ;;  %v1085_v62 = vmul.f32 0.70710677, %v1055_v61  ;;  %2187 = verf.f32 %v1088_v56  ;;  %v1077_v25 = vmul.f32 0.5, %v1055_v61 }
 0x1ca   : > { %v621_v43 = vpack.c.bf16 %v617_v23, %v616_v54  ;;  %v1089_v63 = vmul.f32 0.70710677, %v1071_v57  ;;  %v2178_v0 = vpop.eup %2177  ;;  %v1080_v28 = vmul.f32 0.5, %v1068_v27  ;;  %v1081_v18 = vmul.f32 0.5, %v1071_v57 }
 0x1cb   : > { %v869_v1 = vpack.c.bf16 %v865_v60, %v864_v59  ;;  %2189 = verf.f32 %v1085_v62  ;;  %v2180_v45 = vpop.eup %2179  ;;  %v1098_v3 = vadd.f32 1.0, %v2178_v0 }
 0x1cc   : > { %625 = vst [vmem:[#allocation2 + $0x48] sm:$0xff] %v621_v43  ;;  %2191 = verf.f32 %v1089_v63  ;;  %v1102_v8 = vadd.f32 1.0, %v2180_v45 }
 0x1cd   : > { %v2182_v7 = vpop.eup %2181  ;;  %873 = vst [vmem:[#allocation2 + $0x50] sm:$0xff] %v869_v1  ;;  %v1106_v14 = vmul.f32 %v1098_v3, %v1074_v58 }
 0x1ce   : > { %v2184_v6 = vpop.eup %2183  ;;  %v1099_v10 = vadd.f32 1.0, %v2182_v7  ;;  %v1110_v16 = vmul.f32 %v1102_v8, %v1078_v11 }
 0x1cf   : > { %v1103_v13 = vadd.f32 1.0, %v2184_v6 }
 0x1d0   : > { %v1107_v15 = vmul.f32 %v1099_v10, %v1075_v9 }
 0x1d1   : > { %v1111_v17 = vmul.f32 %v1103_v13, %v1079_v12 }
 0x1d2   : > { %v1114_v2 = vpack.c.bf16 %v1107_v15, %v1106_v14  ;;  %v2186_v19 = vpop.eup %2185 }
 0x1d3   : > { %v1116_v20 = vpack.c.bf16 %v1111_v17, %v1110_v16  ;;  %v2188_v21 = vpop.eup %2187  ;;  %v1100_v5 = vadd.f32 1.0, %v2186_v19 }
 0x1d4   : > { %1118 = vst [vmem:[#allocation2 + $0x10] sm:$0xff] %v1114_v2  ;;  %v1104_v4 = vadd.f32 1.0, %v2188_v21 }
 0x1d5   : > { %v2190_v22 = vpop.eup %2189  ;;  %1120 = vst [vmem:[#allocation2 + $0x40] sm:$0xff] %v1116_v20  ;;  %v1108_v32 = vmul.f32 %v1100_v5, %v1076_v24 }
 0x1d6   : > { %v2192_v55 = vpop.eup %2191  ;;  %v1101_v49 = vadd.f32 1.0, %v2190_v22  ;;  %v1112_v34 = vmul.f32 %v1104_v4, %v1080_v28 }
 0x1d7   : > { %v1105_v30 = vadd.f32 1.0, %v2192_v55 }
 0x1d8   : > { %v1109_v33 = vmul.f32 %v1101_v49, %v1077_v25 }
 0x1d9   : > { %v1113_v35 = vmul.f32 %v1105_v30, %v1081_v18 }
 0x1da   : > { %v1115_v36 = vpack.c.bf16 %v1109_v33, %v1108_v32 }
 0x1db   : > { %v1117_v37 = vpack.c.bf16 %v1113_v35, %v1112_v34 }
 0x1dc   : > { %1119 = vst [vmem:[#allocation2 + $0x28] sm:$0xff] %v1115_v36 }
 0x1dd   : > { %1121 = vst [vmem:[#allocation2 + $0x58] sm:$0xff] %v1117_v37 }
 0x1de PF: > { %v2193_v38 = vld [vmem:[%s2799_s9 + $0x40] sm:$0xff]   ;;  %v2195_v40 = vld [vmem:[%s2799_s9 + $0x48] sm:$0xff]   ;;  %v2198_v29 = vld [vmem:[%s2799_s9 + $0x50] sm:$0xff]   ;;  %s3130_s10 = sld [smem:[#allocation16_spill]]  ;;  %s1487_s29 = sshll.u32 %s2816_s13, 4  ;;  %s2983_s29 = int_to_ptr.vmem [resolvable:$true] %s1487_s29 }
 0x1df   : > { %v2194_v39 = vld [vmem:[%s2799_s9] sm:$0xff]   ;;  %1839 = vmatprep.subr.bf16.mxu0 %v2193_v38  ;;  %v2197_v42 = vld [vmem:[%s2799_s9 + $0x8] sm:$0xff]   ;;  %v2200_v46 = vld [vmem:[%s2799_s9 + $0x10] sm:$0xff]   ;;  %s3131_s24 = sld [smem:[#allocation28_spill]]  ;;  %s2989_s0 = scalar_lea.sflag [#allocation5], %s317_s15 }
 0x1e0   : > { %1840 = vmatpush3.bf16.msra.mxu0 %v2194_v39  ;;  %v2196_v41 = vld [vmem:[%s2799_s9 + $0x80] sm:$0xff]   ;;  %v2199_v44 = vld [vmem:[%s2799_s9 + $0x88] sm:$0xff]   ;;  %v2201_v26 = vld [vmem:[%s2799_s9 + $0x58] sm:$0xff]   ;;  %s2305_s28 = scalar_lea.vmem %s2983_s29, 1024  ;;  %p3133_p9 = scmp.ne.s32.totalorder %s3111_s21, 0 }
 0x1e1   : > { %1841 = vmatprep.subr.bf16.mxu0 %v2195_v40  ;;  %1891 = vmatprep.subr.bf16.mxu1 %v2196_v41  ;;  %v2202_v31 = vld [vmem:[%s2799_s9 + $0x90] sm:$0xff]   ;;  %v2203_v47 = vld [vmem:[%s2799_s9 + $0x18] sm:$0xff]   ;;  %v2204_v48 = vld [vmem:[%s2799_s9 + $0x60] sm:$0xff]   ;;  %p2306_p11 = scmp.ne.s32.totalorder %s2983_s29, %s2305_s28  ;;  %s2470_s26 = smov [#allocation9]  }
 0x1e2   : > { %1892 = vmatpush3.bf16.msra.mxu1 %v2196_v41  ;;  %v2205_v27 = vld [vmem:[%s2799_s9 + $0x98] sm:$0xff]   ;;  %v2206_v50 = vld [vmem:[%s2799_s9 + $0x20] sm:$0xff]   ;;  %v2207_v52 = vld [vmem:[%s2799_s9 + $0x68] sm:$0xff]   ;;  %s2309_s17 = sshll.u32 %s2470_s26, 4  ;;  %s2310_s17 = int_to_ptr.vmem [resolvable:$false] %s2309_s17 }
 0x1e3   : > { %1893 = vmatprep.subr.bf16.mxu1 %v2199_v44  ;;  %v2208_v51 = vld [vmem:[%s2799_s9 + $0xa0] sm:$0xff]   ;;  %v2209_v53 = vld [vmem:[%s2799_s9 + $0x28] sm:$0xff]   ;;  %v2210_v54 = vld [vmem:[%s2799_s9 + $0x70] sm:$0xff]   ;;  %p2307_p10 = pnand %p2306_p11, %p3133_p9  ;;  %s2311_s23 = scalar_lea.vmem %s2310_s17, 2048 }
 0x1e4   : > { %1842 = vmatpush3.bf16.msra.mxu0 %v2197_v42  ;;  %v2211_v61 = vld [vmem:[%s2799_s9 + $0xa8] sm:$0xff]   ;;  %v2212_v23 = vld [vmem:[%s2799_s9 + $0x30] sm:$0xff]   ;;  %v2213_v59 = vld [vmem:[%s2799_s9 + $0x78] sm:$0xff]   ;;  %p2312_p1 = scmp.lt.s32.totalorder %s2983_s29, %s2310_s17  ;;  %p2313_p4 = scmp.lt.s32.totalorder %s2311_s23, %s2305_s28 }
 0x1e5   : > { %1843 = vmatprep.subr.bf16.mxu0 %v2198_v29  ;;  %v2214_v56 = vld [vmem:[%s2799_s9 + $0xb0] sm:$0xff]   ;;  %v1123_v57 = vld [vmem:[#allocation2 + $0x8] sm:$0xff]  ;;  %v2215_v62 = vld [vmem:[%s2799_s9 + $0x38] sm:$0xff]   ;;  %s3132_s14 = smov %s3131_s24  ;;  %p2308_p6 = pneg %p2307_p10 }
 0x1e6   : > { %1894 = vmatpush3.bf16.msra.mxu1 %v2199_v44  ;;  %1365 = vmatprep.mubr.bf16.mxu0 %v1123_v57  ;;  %v1124_v60 = vld [vmem:[#allocation2 + $0x10] sm:$0xff]  ;;  %v2216_v43 = vld [vmem:[%s2799_s9 + $0xb8] sm:$0xff]   ;;  %v1122_v63 = vld [vmem:[#allocation2] sm:$0xff]  ;;  %s3129_s9 = sld [smem:[#allocation17_spill]]  ;;  %p2314_p12 = por %p2313_p4, %p2312_p1 }
 0x1e7   : > { %1895 = vmatprep.subr.bf16.mxu1 %v2202_v31  ;;  %1907 = vmatprep.mubr.bf16.mxu1 %v1124_v60  ;;  %v1126_v0 = vld [vmem:[#allocation2 + $0x20] sm:$0xff]  ;;  %v1127_v1 = vld [vmem:[#allocation2 + $0x28] sm:$0xff]  ;;  %v1125_v3 = vld [vmem:[#allocation2 + $0x18] sm:$0xff] }
 0x1e8   : > { %1844 = vmatpush3.bf16.msra.mxu0 %v2200_v46  ;;  %v1130_v45 = vld [vmem:[#allocation2 + $0x40] sm:$0xff]  ;;  %v1129_v7 = vld [vmem:[#allocation2 + $0x38] sm:$0xff]  ;;  %v1128_v6 = vld [vmem:[#allocation2 + $0x30] sm:$0xff]  ;;  %p2315_p8 = pnand %p2314_p12, %p2308_p6 }
 0x1e9   : > { %1845 = vmatprep.subr.bf16.mxu0 %v2201_v26  ;;  %v1133_v8 = vld [vmem:[#allocation2 + $0x58] sm:$0xff]  ;;  %v1132_v58 = vld [vmem:[#allocation2 + $0x50] sm:$0xff]  ;;  %v1131_v9 = vld [vmem:[#allocation2 + $0x48] sm:$0xff] }
 0x1ea   : > { %1896 = vmatpush3.bf16.msra.mxu1 %v2202_v31  ;;  %v1686_v12 = vld [vmem:[%s323_s8] ss:$0 sm:$0xff] }
 0x1eb   : > { %1897 = vmatprep.subr.bf16.mxu1 %v2205_v27 }
 0x1ec   : > { %1846 = vmatpush3.bf16.msra.mxu0 %v2203_v47  ;;  %s1933_s5 = smul.u32 24, %s3129_s9 }
 0x1ed   : > { %1847 = vmatprep.subr.bf16.mxu0 %v2204_v48 }
 0x1ee   : > { %1898 = vmatpush3.bf16.msra.mxu1 %v2205_v27  ;;  %s1484_s30 = sadd.s32 %s3130_s10, %s1933_s5 }
 0x1ef   : > { %1899 = vmatprep.subr.bf16.mxu1 %v2208_v51  ;;  %s1714_s16 = sshll.u32 %s1484_s30, 7 }
 0x1f0   : > { %1848 = vmatpush3.bf16.msra.mxu0 %v2206_v50  ;;  %s2981_s27 = scalar_lea.hbm %s3131_s24, %s1714_s16 }
 0x1f1   : > { %1849 = vmatprep.subr.bf16.mxu0 %v2207_v52 }
 0x1f2   : > { %1900 = vmatpush3.bf16.msra.mxu1 %v2208_v51 }
 0x1f3   : > { %1901 = vmatprep.subr.bf16.mxu1 %v2211_v61 }
 0x1f4   : > { %1850 = vmatpush3.bf16.msra.mxu0 %v2209_v53 }
 0x1f5   : > { %1851 = vmatprep.subr.bf16.mxu0 %v2210_v54 }
 0x1f6   : > { %1902 = vmatpush3.bf16.msra.mxu1 %v2211_v61 }
 0x1f7   : > { %1903 = vmatprep.subr.bf16.mxu1 %v2214_v56 }
 0x1f8   : > { %1852 = vmatpush3.bf16.msra.mxu0 %v2212_v23 }
 0x1f9   : > { %1853 = vmatprep.subr.bf16.mxu0 %v2213_v59 }
 0x1fa   : > { %1904 = vmatpush3.bf16.msra.mxu1 %v2214_v56 }
 0x1fb   : > { %1905 = vmatprep.subr.bf16.mxu1 %v2216_v43 }
 0x1fc   : > { %1854 = vmatpush3.bf16.msra.mxu0 %v2215_v62 }
 0x1fe   : > { %1906 = vmatpush3.bf16.msra.mxu1 %v2216_v43 }
 0x1ff   : > { %1366 = vmatmul.mubr.bf16.vlgmr.msra.gmra.mrb[0].mxu0 %v1122_v63 }
 0x200   : > { %1373 = vmatprep.mubr.bf16.mxu0 %v1126_v0 }
 0x201   : > { %1908 = vmatmul.mubr.bf16.vlgmr.msra.gmra.mrb[0].mxu1 %v1127_v1 }
 0x202   : > { %1911 = vmatprep.mubr.bf16.mxu1 %v1130_v45 }
 0x207   : > { %1374 = vmatmul.mubr.bf16.gmra.mrb[4].mxu0 %v1125_v3 }
 0x208   : > { %1381 = vmatprep.mubr.bf16.mxu0 %v1129_v7 }
 0x209   : > { %1912 = vmatmul.mubr.bf16.gmra.mrb[4].mxu1 %v1133_v8 }
 0x20f   : > { %1382 = vmatmul.mubr.bf16.gmra.mrb[8].mxu0 %v1128_v6 }
 0x210   : > { %1389 = vmatprep.mubr.bf16.mxu0 %v1132_v58 }
 0x217   : > { %1390 = vmatmul.mubr.bf16.gmra.mrb[12].mxu0 %v1131_v9 }
 0x2d2   : > { %v1855_v10 = vpop.f32.mrb[0].mxu0 }
 0x2d3   : > { %v1856_v11 = vpop.f32.mrb[1].mxu0 }
 0x2d4   : > { %v1857_v13 = vadd.f32 %v1856_v11, %v1855_v10  ;;  %v1858_v14 = vpop.f32.mrb[2].mxu0  ;;  %v1909_v16 = vpop.f32.mrb[0].mxu1 }
 0x2d5   : > { %v1859_v15 = vpop.f32.mrb[3].mxu0  ;;  %v1432_v19 = vpop.f32.mrb[1].mxu1 }
 0x2d6   : > { %v1860_v17 = vadd.f32 %v1859_v15, %v1858_v14  ;;  %v1368_v2 = vadd.f32 %v1857_v13, %v1686_v12  ;;  %v1910_v20 = vpop.f32.mrb[2].mxu1 }
 0x2d7   : > { %v1435_v22 = vpop.f32.mrb[3].mxu1 }
 0x2d8   : > { %v1433_v21 = vadd.f32 %v1432_v19, %v1368_v2  ;;  %v1371_v5 = vadd.f32 %v1860_v17, %v1686_v12 }
 0x2da   : > { %1463 = vst [vmem:[%s2816_s13] sm:$0xff] %v1433_v21  ;;  %v1436_v4 = vadd.f32 %v1435_v22, %v1371_v5  ;;  %v1861_v55 = vpop.f32.mrb[4].mxu0 }
 0x2db   : > { %v1862_v24 = vpop.f32.mrb[5].mxu0 }
 0x2dc   : > { %1464 = vst [vmem:[%s2816_s13 + $0x8] sm:$0xff] %v1436_v4  ;;  %v1863_v25 = vadd.f32 %v1862_v24, %v1861_v55  ;;  %v1864_v49 = vpop.f32.mrb[6].mxu0  ;;  %v1913_v18 = vpop.f32.mrb[4].mxu1 }
 0x2dd   : > { %v1865_v28 = vpop.f32.mrb[7].mxu0  ;;  %v1448_v33 = vpop.f32.mrb[5].mxu1 }
 0x2de   : > { %v1376_v30 = vadd.f32 %v1863_v25, %v1686_v12  ;;  %v1866_v32 = vadd.f32 %v1865_v28, %v1864_v49  ;;  %v1914_v34 = vpop.f32.mrb[6].mxu1 }
 0x2df   : > { %v1451_v37 = vpop.f32.mrb[7].mxu1 }
 0x2e0   : > { %v1441_v35 = vadd.f32 %v1909_v16, %v1376_v30  ;;  %v1379_v36 = vadd.f32 %v1866_v32, %v1686_v12 }
 0x2e2   : > { %1465 = vst [vmem:[%s2816_s13 + $0x10] sm:$0xff] %v1441_v35  ;;  %v1444_v38 = vadd.f32 %v1910_v20, %v1379_v36  ;;  %v1867_v39 = vpop.f32.mrb[8].mxu0 }
 0x2e3   : > { %v1868_v40 = vpop.f32.mrb[9].mxu0 }
 0x2e4   : > { %1466 = vst [vmem:[%s2816_s13 + $0x18] sm:$0xff] %v1444_v38  ;;  %v1869_v41 = vadd.f32 %v1868_v40, %v1867_v39  ;;  %v1870_v42 = vpop.f32.mrb[10].mxu0 }
 0x2e5   : > { %v1871_v29 = vpop.f32.mrb[11].mxu0 }
 0x2e6   : > { %v1872_v44 = vadd.f32 %v1871_v29, %v1870_v42  ;;  %v1384_v46 = vadd.f32 %v1869_v41, %v1686_v12 }
 0x2e8   : > { %v1449_v26 = vadd.f32 %v1448_v33, %v1384_v46  ;;  %v1387_v31 = vadd.f32 %v1872_v44, %v1686_v12 }
 0x2ea   : > { %1467 = vst [vmem:[%s2816_s13 + $0x20] sm:$0xff] %v1449_v26  ;;  %v1452_v47 = vadd.f32 %v1451_v37, %v1387_v31  ;;  %v1873_v48 = vpop.f32.mrb[12].mxu0 }
 0x2eb   : > { %v1874_v27 = vpop.f32.mrb[13].mxu0 }
 0x2ec   : > { %1468 = vst [vmem:[%s2816_s13 + $0x28] sm:$0xff] %v1452_v47  ;;  %v1875_v50 = vadd.f32 %v1874_v27, %v1873_v48  ;;  %v1876_v51 = vpop.f32.mrb[14].mxu0 }
 0x2ed   : > { %v1877_v52 = vpop.f32.mrb[15].mxu0 }
 0x2ee   : > { %v1392_v53 = vadd.f32 %v1875_v50, %v1686_v12  ;;  %v1878_v61 = vadd.f32 %v1877_v52, %v1876_v51 }
 0x2f0   : > { %v1457_v54 = vadd.f32 %v1913_v18, %v1392_v53  ;;  %v1395_v23 = vadd.f32 %v1878_v61, %v1686_v12 }
 0x2f2   : > { %1469 = vst [vmem:[%s2816_s13 + $0x30] sm:$0xff] %v1457_v54  ;;  %v1460_v56 = vadd.f32 %v1914_v34, %v1395_v23 }
 0x2f4   : > { %1470 = vst [vmem:[%s2816_s13 + $0x38] sm:$0xff] %v1460_v56 }
 0x2f5   : > { %2318 = shalt.err (!%p2315_p8)
}
 0x2f6   : > { %s2319_s15 = scalar_lea.hbm %s2981_s27, 1024  ;;  %s2323_s9 = scalar_lea.hbm %s3132_s14, 9216 }
 0x2f7   : > { %p2320_p2 = scmp.ne.s32.totalorder %s2981_s27, %s2319_s15  ;;  %p2324_p7 = scmp.lt.u32.totalorder %s2981_s27, %s3132_s14 }
 0x2f8   : > { %p2325_p5 = scmp.lt.u32.totalorder %s2323_s9, %s2319_s15  ;;  %p2327_p11 = scmp.lt.u32.totalorder %s2319_s15, %s2981_s27 }
 0x2f9   : > { %p2321_p0 = pnand %p2320_p2, %p3133_p9 }
 0x2fa   : > { %p2326_p3 = por %p2325_p5, %p2324_p7 }
 0x2fb   : > { %p2322_p13 = pneg %p2321_p0 }
 0x2fc   : > { %p2328_p10 = por %p2327_p11, %p2326_p3 }
 0x2fe   : > { %p2329_p6 = pnand %p2328_p10, %p2322_p13 }
 0x300   : > { %2332 = shalt.err (!%p2329_p6)
}
 0x301   : > { %s2471_s30 = smov 128   ;;  %s2472_s16 = smov 384  }
 0x302   : > { %s2473_s4 = smov 8  }
 0x303   : > { %1942 = dma.vmem_to_hbm [thread:$0]  (%p3133_p9), %s2983_s29, 1024, %s2981_s27, %s2989_s0, %s2471_s30, %s2472_s16, %s2473_s4  }
 0x304 PF: > { %p1962_p1 = scmp.ge.s32.totalorder %s2459_s6, 2  ;;  %s1502_s8 = sand.u32 1, %s2407_s18  }
 0x305   : > { %p3134_p4 = scmp.ne.s32.totalorder %s3112_s11, 0  ;;  %s1503_s24 = scalar_lea.sflag [#allocation5], %s1502_s8 }
 0x307   : > { %p1956_p12 = pnand %p1962_p1, %p3134_p4 }
 0x309   : > { %2402 = dma.done.wait (!%p1956_p12), %s1503_s24, 1024  }
 0x30a   : > { %2404 = vsyncadd (!%p1956_p12), %s1503_s24, 4294966272  ;;  %s22_s6 = sadd.s32 1, %s2459_s6   ;;  %s3136_s29 = sld [smem:[#allocation14_spill]] }
 0x30b   : > { %p3018_p8 = scmp.ge.s32.totalorder %s22_s6, 11   ;;  %s3137_s23 = sld [smem:[#allocation23_spill]] }
 0x30c   : > { %s3138_s27 = sld [smem:[#allocation15_spill]]  ;;  %s3139_s26 = sld [smem:[#allocation22_spill]] }
 0x30d   : > { %s3140_s11 = sld [smem:[#allocation18_spill]]  ;;  %s3141_s0 = sld [smem:[#allocation19_spill]] }
 0x30e   : > { %s3142_s17 = sld [smem:[#allocation20_spill]]  ;;  %s3143_s30 = sld [smem:[#allocation21_spill]] }
 0x30f   : > { %s3145_s18 = smov %s2411_s19  ;;  %s3146_s19 = smov %s2415_s20 }
 0x310   : > { %s3147_s20 = smov %s2607_s7  ;;  %s3148_s21 = smov %s2423_s22 }
 0x311   : > { %s3149_s22 = smov %s3136_s29  ;;  %s3150_s24 = smov %s2435_s25 }
 0x312   : > { %s3151_s25 = smov %s3138_s27  ;;  %21 = sbr.rel (!%p3018_p8) target bundleno = 17 (0x11), region = 107 }
 0x313   : > { %s3152_s27 = smov %s3140_s11  ;;  %s3153_s28 = smov %s3141_s0 }
 0x314   : > { %s3154_s29 = smov %s3142_s17 }
 0x319   :  { %1508 = vsyncpa [#allocation4], 1 }
 0x31a   :  { %1510 = vsyncpa [#allocation4 + $0x1], 1 }
 0x31b   :  { %1511 = vsyncpa [#allocation7], 1 }
 0x31c   :  { %1512 = vsyncpa [#allocation5], 1 }
 0x31d   :  { %1514 = vsyncpa [#allocation5 + $0x1], 1 }

// kernel: tpu_custom_call.1
= control target key start
LH: loop header
LB: loop body
LE: loop exit
PB: predicated region body
PF: predicated region fallthrough
CT: control target
= control target key end

     0   :  { %s3065_s0 = inlined_call_operand.hbm [shape: bf16[192,256], index: 0, kind: input, shape index: {}]   ;;  %s3066_s1 = inlined_call_operand.hbm [shape: bf16[256,384], index: 1, kind: input, shape index: {}]   ;;  %s3067_s2 = inlined_call_operand.vmem [shape: f32[1,384], index: 2, kind: input, shape index: {}]   ;;  %s3068_s3 = inlined_call_operand.hbm [shape: bf16[384,384], index: 3, kind: input, shape index: {}]   ;;  %s3069_s4 = inlined_call_operand.vmem [shape: f32[1,384], index: 4, kind: input, shape index: {}]   ;;  %s3070_s5 = inlined_call_operand.hbm [shape: f32[192,384], index: 5, kind: output, shape index: {}]  }
   0x1   :  { %3089 = sst [smem:[#allocation24_spill]] %s3065_s0 }
   0x2   :  { %3090 = sst [smem:[#allocation25_spill]] %s3067_s2 }
   0x3   :  { %3091 = sst [smem:[#allocation26_spill]] %s3068_s3 }
   0x4   :  { %3092 = sst [smem:[#allocation27_spill]] %s3069_s4 }
   0x5   :  { %3093 = sst [smem:[#allocation28_spill]] %s3070_s5 }
   0x6   :  { %10 = vsyncpa [#allocation4], 0 }
   0x7   :  { %12 = vsyncpa [#allocation4 + $0x1], 0 }
   0x8   :  { %13 = vsyncpa [#allocation7], 0 }
   0x9   :  { %14 = vsyncpa [#allocation5], 0 }
   0xa   :  { %16 = vsyncpa [#allocation5 + $0x1], 0  ;;  %s2504_s18 = smov 0   ;;  %s2506_s19 = smov 0  }
   0xb   :  { %s2508_s20 = smov 0   ;;  %s2510_s21 = smov 0  }
   0xc   :  { %s2512_s22 = smov 0   ;;  %s2514_s23 = smov 0  }
   0xd   :  { %s2516_s24 = smov 0   ;;  %s2518_s25 = smov 0  }
   0xe   :  { %s2520_s26 = smov 0   ;;  %s2522_s27 = smov 0  }
   0xf   :  { %s2524_s28 = smov 0   ;;  %s2526_s29 = smov 0  }
  0x10   :  { %s2528_s30 = smov 0   ;;  %s2530_s6 = smov 0  }
  0x11 LB: > { %3094 = sst [smem:[#allocation14_spill]] %s2427_s23  ;;  %s31_s7 = sadd.s32 1, %s2451_s29  ;;  %s2459_s6 = sphi %s2530_s6, %s22_s6   ;;  %s2455_s30 = sphi %s2528_s30, %s3143_s30   ;;  %s2451_s29 = sphi %s2526_s29, %s3154_s29   ;;  %s2447_s28 = sphi %s2524_s28, %s3153_s28   ;;  %s2443_s27 = sphi %s2522_s27, %s3152_s27   ;;  %s2439_s26 = sphi %s2520_s26, %s3139_s26   ;;  %s2435_s25 = sphi %s2518_s25, %s3151_s25   ;;  %s2431_s24 = sphi %s2516_s24, %s3150_s24   ;;  %s2427_s23 = sphi %s2514_s23, %s3137_s23   ;;  %s2423_s22 = sphi %s2512_s22, %s3149_s22   ;;  %s2419_s21 = sphi %s2510_s21, %s3148_s21   ;;  %s2415_s20 = sphi %s2508_s20, %s3147_s20   ;;  %s2411_s19 = sphi %s2506_s19, %s3146_s19   ;;  %s2407_s18 = sphi %s2504_s18, %s3145_s18  }
  0x12   : > { %3095 = sst [smem:[#allocation15_spill]] %s2439_s26  ;;  %s34_s8 = sadd.s32 1, %s2455_s30 }
  0x13   : > { %3096 = sst [smem:[#allocation16_spill]] %s2443_s27  ;;  %p32_p0 = scmp.ge.s32.totalorder %s31_s7, 3 }
  0x14   : > { %3097 = sst [smem:[#allocation17_spill]] %s2447_s28  ;;  %s41_s9 = sadd.s32 1, %s2439_s26 }
  0x15   : > { %3098 = sst [smem:[#allocation18_spill]] %s2451_s29  ;;  %p48_p1 = scmp.ne.s32.totalorder %s2439_s26, %s2435_s25 }
  0x16   : > { %3099 = sst [smem:[#allocation19_spill]] %s2455_s30  ;;  %p3078_p2 = scmp.eq.s32.totalorder %s2459_s6, 0 }
  0x17   : > { %s3156_s7 = smov (%p32_p0, %s31_s7), 0  ;;  %s3158_s8 = smov (!%p32_p0, %s34_s8), %s2455_s30 }
  0x18   : > { %3100 = sst [smem:[#allocation20_spill]] %s3156_s7  ;;  %p2585_p3 = por %p3078_p2, %p48_p1 }
  0x19   : > { %s2591_s11 = ssub.s32 %s2451_s29, %s3156_s7  ;;  %p36_p4 = scmp.ge.s32.totalorder %s3158_s8, 3 }
  0x1a   : > { %p107_p5 = scmp.eq.s32.totalorder %s2591_s11, 0  ;;  %s163_s12 = sadd.s32 1, %s2415_s20 }
  0x1b   : > { %s3160_s8 = smov (%p36_p4, %s3158_s8), 0  ;;  %p3077_p6 = scmp.lt.s32.totalorder %s2459_s6, 9 }
  0x1c   : > { %3102 = sst [smem:[#allocation21_spill]] %s3160_s8  ;;  %s216_s13 = sand.u32 1, %s2459_s6  }
  0x1d   : > { %s38_s14 = ssub.s32 %s2455_s30, %s3160_s8  ;;  %s218_s16 = sand.u32 1, %s2439_s26  }
  0x1e   : > { %p39_p7 = scmp.eq.s32.totalorder %s38_s14, 0  ;;  %s160_s15 = sor.u32 %s2591_s11, %s38_s14 }
  0x1f   : > { %p161_p8 = scmp.eq.s32.totalorder %s160_s15, 0  ;;  %s1617_s5 = sshll.u32 %s218_s16, 6 }
  0x20   : > { %s2604_s17 = scalar_select %p39_p7, %s2439_s26, %s41_s9  }
  0x21   : > { %s2607_s7 = scalar_select %p161_p8, %s2415_s20, %s163_s12  }
  0x22   : > { %3103 = sst [smem:[#allocation22_spill]] %s2604_s17  ;;  %s1718_s28 = sshll.u32 %s2455_s30, 10 }
  0x23   : > { %s3104_s0 = sld [smem:[#allocation24_spill]]  ;;  %s220_s8 = scalar_lea.vmem [#allocation3], %s1617_s5 }
  0x24   : > { %s228_s3 = sshll.u32 %s220_s8, 4  ;;  %p2619_p9 = pnand %p3077_p6, %p2585_p3  ;;  %s2623_s3 = int_to_ptr.vmem [resolvable:$true] %s228_s3 }
  0x25   : > { %s2625_s12 = scalar_lea.sflag [#allocation4], %s216_s13 }
  0x26   : > { %p2219_p11 = pneg %p2619_p9 }
  0x29   : > { %s2613_s27 = scalar_lea.hbm %s3104_s0, %s1718_s28  ;;  %s2222_s28 = scalar_lea.hbm %s3104_s0, 3072 }
  0x2a   : > { %s2217_s2 = scalar_lea.hbm %s2613_s27, 1024  ;;  %p2223_p0 = scmp.lt.u32.totalorder %s2613_s27, %s3104_s0 }
  0x2b   : > { %p2218_p10 = scmp.ne.s32.totalorder %s2613_s27, %s2217_s2  ;;  %p2224_p1 = scmp.lt.u32.totalorder %s2222_s28, %s2217_s2 }
  0x2c   : > { %p2226_p4 = scmp.lt.u32.totalorder %s2217_s2, %s2613_s27 }
  0x2d   : > { %p2220_p12 = pnand %p2219_p11, %p2218_p10  ;;  %p2225_p3 = por %p2224_p1, %p2223_p0 }
  0x2f   : > { %p2221_p13 = pneg %p2220_p12  ;;  %p2227_p7 = por %p2226_p4, %p2225_p3 }
  0x31   : > { %p2228_p8 = pnand %p2227_p7, %p2221_p13 }
  0x33   : > { %2231 = shalt.err (!%p2228_p8)
}
  0x34   : > { %s2232_s13 = scalar_lea.vmem %s2623_s3, 1024  ;;  %s2461_s14 = smov [#allocation3]  }
  0x35   : > { %p2233_p10 = scmp.ne.s32.totalorder %s2623_s3, %s2232_s13  ;;  %s2237_s15 = sshll.u32 %s2461_s14, 4  ;;  %s2238_s15 = int_to_ptr.vmem [resolvable:$false] %s2237_s15 }
  0x36   : > { %s2239_s16 = scalar_lea.vmem %s2238_s15, 2048  ;;  %p2240_p2 = scmp.lt.s32.totalorder %s2623_s3, %s2238_s15 }
  0x37   : > { %p2235_p12 = pnand %p2233_p10, %p2219_p11  ;;  %p2241_p0 = scmp.lt.s32.totalorder %s2239_s16, %s2232_s13 }
  0x39   : > { %p2236_p6 = pneg %p2235_p12  ;;  %p2242_p1 = por %p2241_p0, %p2240_p2 }
  0x3b   : > { %p2243_p3 = pnand %p2242_p1, %p2236_p6 }
  0x3d   : > { %2246 = shalt.err (!%p2243_p3)
}
  0x3e   : > { %s2462_s2 = smov 128   ;;  %s2463_s4 = smov 8  }
  0x3f   : > { %1951 = dma.hbm_to_vmem [thread:$0]  (!%p2619_p9), %s2613_s27, 1024, %s2623_s3, %s2625_s12, %s2462_s2, %s2462_s2, %s2463_s4  }
  0x40   : > { %s2654_s5 = sadd.s32 4294967295, %s2459_s6   ;;  %s1613_s28 = sadd.s32 4294967294, %s2459_s6  }
  0x41   : > { %p54_p2 = scmp.ne.s32.totalorder %s2435_s25, %s2431_s24  ;;  %p3081_p6 = scmp.eq.s32.totalorder %s2654_s5, 0 }
  0x42   : > { %s109_s8 = sadd.s32 1, %s2427_s23  ;;  %p116_p11 = scmp.ne.s32.totalorder %s2427_s23, %s2423_s22 }
  0x43   : > { %p2665_p13 = por %p3081_p6, %p54_p2  ;;  %p122_p4 = scmp.ne.s32.totalorder %s2423_s22, %s2419_s21 }
  0x44   : > { %s2674_s3 = scalar_select %p107_p5, %s2427_s23, %s109_s8  }
  0x45   : > { %s3106_s10 = scalar_select %p2665_p13, 1, 0 }
  0x46   : > { %3107 = sst [smem:[#allocation23_spill]] %s2674_s3  ;;  %p3108_p9 = scmp.eq.s32.totalorder %s2459_s6, 0 }
  0x47   : > { %p2684_p8 = por %p122_p4, %p3081_p6  ;;  %p173_p10 = scmp.ne.s32.totalorder %s2415_s20, %s2411_s19 }
  0x48   : > { %p2678_p7 = por %p116_p11, %p3108_p9  ;;  %p174_p12 = scmp.eq.s32.totalorder %s2654_s5, 8 }
  0x49   : > { %s3110_s24 = scalar_select %p2684_p8, 1, 0 }
  0x4a   : > { %p179_p0 = scmp.ne.s32.totalorder %s2411_s19, %s2407_s18  ;;  %p180_p5 = scmp.eq.s32.totalorder %s1613_s28, 8 }
  0x4b   : > { %p2693_p1 = por %p174_p12, %p173_p10  ;;  %p1614_p3 = scmp.ge.s32.totalorder %s2459_s6, 1 }
  0x4c   : > { %p2698_p2 = por %p180_p5, %p179_p0  ;;  %p187_p11 = scmp.lt.s32.totalorder %s2459_s6, 10 }
  0x4d   : > { %s3111_s21 = scalar_select %p2693_p1, 1, 0 }
  0x4e   : > { %s3112_s11 = scalar_select %p2698_p2, 1, 0 }
  0x4f   : > { %p2703_p4 = pnand %p1614_p3, %p187_p11  ;;  %s2464_s13 = smov [#allocation6]  }
  0x50   : > { %s199_s14 = sshll.u32 %s2464_s13, 4  ;;  %p3114_p10 = scmp.lt.s32.totalorder %s2459_s6, 9  ;;  %s2707_s14 = int_to_ptr.vmem [resolvable:$true] %s199_s14 }
  0x51   : > { %s3113_s9 = scalar_select %p2703_p4, 1, 0 }
  0x52   : > { %p1944_p9 = pneg %p2703_p4  ;;  %p2715_p12 = pnand %p3114_p10, %p2678_p7 }
  0x53   : > { %s240_s16 = sand.u32 1, %s2427_s23   ;;  %s1621_s28 = sshll.u32 %s2451_s29, 6 }
  0x54   : > { %s3115_s15 = scalar_select %p2715_p12, 1, 0 }
  0x55   : > { %p2722_p0 = pnand %p1944_p9, %p3081_p6  ;;  %s1931_s4 = smul.u32 192, %s240_s16 }
  0x56   : > { %s2247_s0 = scalar_lea.hbm %s3066_s1, 6144 }
  0x57   : > { %p2248_p7 = scmp.ne.s32.totalorder %s3066_s1, %s2247_s0  ;;  %p2249_p5 = pneg %p2722_p0 }
  0x58   : > { %p2254_p9 = scmp.lt.u32.totalorder %s2247_s0, %s3066_s1 }
  0x59   : > { %p2250_p3 = pnand %p2249_p5, %p2248_p7 }
  0x5b   : > { %p2251_p11 = pneg %p2250_p3 }
  0x5d   : > { %p2256_p10 = pnand %p2254_p9, %p2251_p11 }
  0x5f   : > { %2259 = shalt.err (!%p2256_p10)
}
  0x60   : > { %s2260_s16 = scalar_lea.vmem %s2707_s14, 6144  ;;  %p2268_p8 = scmp.lt.s32.totalorder %s2707_s14, %s2707_s14 }
  0x61   : > { %p2261_p6 = scmp.ne.s32.totalorder %s2707_s14, %s2260_s16  ;;  %p2269_p13 = scmp.lt.s32.totalorder %s2260_s16, %s2260_s16 }
  0x63   : > { %p2263_p2 = pnand %p2261_p6, %p2249_p5  ;;  %p2270_p4 = por %p2269_p13, %p2268_p8 }
  0x65   : > { %p2264_p1 = pneg %p2263_p2 }
  0x67   : > { %p2271_p12 = pnand %p2270_p4, %p2264_p1 }
  0x69   : > { %2274 = shalt.err (!%p2271_p12)
}
  0x6a   : > { %s2465_s30 = smov 192   ;;  %s2466_s0 = smov 12  }
  0x6b   : > { %1947 = dma.hbm_to_vmem [thread:$0]  (!%p2722_p0), %s3066_s1, 6144, %s2707_s14, [#allocation7], %s2465_s30, %s2465_s30, %s2466_s0  }
  0x6c   : > { %s3117_s27 = sld [smem:[#allocation26_spill]]  ;;  %s242_s29 = scalar_lea.vmem [#allocation8], %s1931_s4 }
  0x6d   : > { %s248_s23 = sshll.u32 %s242_s29, 4  ;;  %p3119_p13 = scmp.ne.s32.totalorder %s3115_s15, 0  ;;  %s2755_s23 = int_to_ptr.vmem [resolvable:$true] %s248_s23 }
  0x6f   : > { %p2277_p8 = pneg %p3119_p13 }
  0x72   : > { %s3118_s3 = smov %s3117_s27  ;;  %s2753_s16 = scalar_lea.hbm %s3117_s27, %s1621_s28 }
  0x73   : > { %s2275_s2 = scalar_lea.hbm %s2753_s16, 3072  ;;  %s2280_s28 = scalar_lea.hbm %s3118_s3, 9216 }
  0x74   : > { %p2276_p6 = scmp.ne.s32.totalorder %s2753_s16, %s2275_s2  ;;  %p2281_p4 = scmp.lt.u32.totalorder %s2753_s16, %s3118_s3 }
  0x75   : > { %p2282_p12 = scmp.lt.u32.totalorder %s2280_s28, %s2275_s2  ;;  %p2284_p7 = scmp.lt.u32.totalorder %s2275_s2, %s2753_s16 }
  0x76   : > { %p2278_p1 = pnand %p2277_p8, %p2276_p6 }
  0x77   : > { %p2283_p0 = por %p2282_p12, %p2281_p4 }
  0x78   : > { %p2279_p2 = pneg %p2278_p1 }
  0x79   : > { %p2285_p5 = por %p2284_p7, %p2283_p0 }
  0x7b   : > { %p2286_p3 = pnand %p2285_p5, %p2279_p2 }
  0x7d   : > { %2289 = shalt.err (!%p2286_p3)
}
  0x7e   : > { %s2290_s29 = scalar_lea.vmem %s2755_s23, 3072  ;;  %s2467_s4 = smov [#allocation8]  }
  0x7f   : > { %p2291_p11 = scmp.ne.s32.totalorder %s2755_s23, %s2290_s29  ;;  %s2295_s8 = sshll.u32 %s2467_s4, 4  ;;  %s2296_s8 = int_to_ptr.vmem [resolvable:$false] %s2295_s8 }
  0x80   : > { %s2297_s13 = scalar_lea.vmem %s2296_s8, 6144  ;;  %p2298_p6 = scmp.lt.s32.totalorder %s2755_s23, %s2296_s8 }
  0x81   : > { %p2293_p9 = pnand %p2291_p11, %p2277_p8  ;;  %p2299_p1 = scmp.lt.s32.totalorder %s2297_s13, %s2290_s29 }
  0x83   : > { %p2294_p10 = pneg %p2293_p9  ;;  %p2300_p4 = por %p2299_p1, %p2298_p6 }
  0x85   : > { %p2301_p12 = pnand %p2300_p4, %p2294_p10 }
  0x87   : > { %2304 = shalt.err (!%p2301_p12)
}
  0x88   : > { %s2468_s27 = smov 64   ;;  %s2469_s2 = smov 4  }
  0x89   : > { %1954 = dma.hbm_to_vmem [thread:$0]  (!%p3119_p13), %s2753_s16, 3072, %s2755_s23, %s2625_s12, %s2465_s30, %s2468_s27, %s2469_s2  }
  0x8a   : > { %p3120_p8 = scmp.ne.s32.totalorder %s3113_s9, 0 }
  0x8b   : > { %s268_s14 = sand.u32 (!%p3120_p8), 1, %s2654_s5   ;;  %s270_s0 = sand.u32 (!%p3120_p8), 1, %s2435_s25  }
  0x8c   : > { %266 = sbr.rel (%p3120_p8) target bundleno = 772 (0x304), region = 40  ;;  %s1623_s28 = sshll.u32 (!%p3120_p8), %s270_s0, 6 }
  0x8d   : > { %s269_s26 = scalar_lea.sflag (!%p3120_p8), [#allocation4], %s268_s14  ;;  %s2788_s17 = scalar_lea.vmem (!%p3120_p8), [#allocation3], %s1623_s28 }
  0x8e   : > { %p3121_p2 = scmp.ne.s32.totalorder (!%p3120_p8), %s3106_s10, 0 }
  0x93   : > { %2390 = dma.done.wait (%p3121_p2), %s269_s26, 1024  }
  0x94   : > { %2392 = vsyncadd (%p3121_p2), %s269_s26, 4294966272  ;;  %p3122_p0 = scmp.eq.s32.totalorder %s2654_s5, 0 }
  0x96   : > { %2394 = dma.done.wait (%p3122_p0), [#allocation7], 6144   ;;  %p3123_p13 = pmov %p3122_p0 }
  0x97   : > { %s283_s23 = sand.u32 1, %s2423_s22   ;;  %p3124_p7 = scmp.ne.s32.totalorder %s3110_s24, 0 }
  0x98   : > { %2396 = vsyncadd (%p3123_p13), [#allocation7], 4294961152  ;;  %s1932_s12 = smul.u32 192, %s283_s23 }
  0x9a   : > { %s2799_s9 = scalar_lea.vmem [#allocation8], %s1932_s12 }
  0x9b   : > { %2398 = dma.done.wait (%p3124_p7), %s269_s26, 3072  }
  0x9c   : > { %2400 = vsyncadd (%p3124_p7), %s269_s26, 4294964224  ;;  %s3125_s10 = sld [smem:[#allocation16_spill]]  ;;  %s317_s15 = sand.u32 1, %s2411_s19  }
  0x9d   : > { %s1625_s5 = sshll.u32 %s317_s15, 6  ;;  %s3126_s4 = sld [smem:[#allocation27_spill]] }
  0x9e   : > { %s2816_s13 = scalar_lea.vmem [#allocation9], %s1625_s5 }
  0xa2   : > { %p321_p5 = scmp.lt.s32.totalorder %s3125_s10, 2  ;;  %p1626_p3 = scmp.ne.s32.totalorder %s3125_s10, 0 }
  0xa3   : > { %v2085_v0 = vld [vmem:[#allocation6 + $0xc0] ss:$12 sps:$4 sm:$0xff] (!%p1626_p3)   ;;  %v2086_v1 = vld [vmem:[#allocation6 + $0xc4] ss:$12 sps:$4 sm:$0xff] (!%p1626_p3)   ;;  %v2090_v5 = vld [vmem:[#allocation6 + $0xdc] ss:$12 sps:$4 sm:$0xff] (!%p1626_p3)  }
  0xa4   : > { %s2810_s30 = scalar_select %p321_p5, %s3125_s10, 2 }
  0xa5   : > { %329 = sbr.rel (%p1626_p3) target bundleno = 478 (0x1de), region = 56  ;;  %1719 = vmatprep.subr.bf16.mxu0 (!%p1626_p3), %v2085_v0  ;;  %v2087_v2 = vld [vmem:[#allocation6] ss:$12 sps:$4 sm:$0xff] (!%p1626_p3)   ;;  %1759 = vmatprep.subr.bf16.mxu1 (!%p1626_p3), %v2086_v1  ;;  %v2088_v3 = vld [vmem:[#allocation6 + $0x4] ss:$12 sps:$4 sm:$0xff] (!%p1626_p3)   ;;  %s3127_s2 = sld [smem:[#allocation25_spill]] (!%p1626_p3) }
  0xa6   : > { %s323_s8 = scalar_lea.vmem %s3126_s4, %s2810_s30  ;;  %1720 = vmatpush3.bf16.msra.mxu0 (!%p1626_p3), %v2087_v2  ;;  %v2089_v4 = vld [vmem:[#allocation6 + $0xd8] ss:$12 sps:$4 sm:$0xff] (!%p1626_p3)   ;;  %1760 = vmatpush3.bf16.msra.mxu1 (!%p1626_p3), %v2088_v3  ;;  %v2092_v7 = vld [vmem:[#allocation6 + $0x1c] ss:$12 sps:$4 sm:$0xff] (!%p1626_p3)   ;;  %v2094_v9 = vld [vmem:[#allocation6 + $0xf4] ss:$12 sps:$4 sm:$0xff] (!%p1626_p3)  }
  0xa7   : > { %1721 = vmatprep.subr.bf16.mxu0 (!%p1626_p3), %v2089_v4  ;;  %v2091_v6 = vld [vmem:[#allocation6 + $0x18] ss:$12 sps:$4 sm:$0xff] (!%p1626_p3)   ;;  %1761 = vmatprep.subr.bf16.mxu1 (!%p1626_p3), %v2090_v5  ;;  %v2093_v8 = vld [vmem:[#allocation6 + $0xf0] ss:$12 sps:$4 sm:$0xff] (!%p1626_p3)   ;;  %v2096_v11 = vld [vmem:[#allocation6 + $0x34] ss:$12 sps:$4 sm:$0xff] (!%p1626_p3)  }
  0xa8   : > { %v2095_v10 = vld [vmem:[#allocation6 + $0x30] ss:$12 sps:$4 sm:$0xff] (!%p1626_p3)   ;;  %v2097_v12 = vld [vmem:[#allocation6 + $0x108] ss:$12 sps:$4 sm:$0xff] (!%p1626_p3)   ;;  %v2098_v13 = vld [vmem:[#allocation6 + $0x10c] ss:$12 sps:$4 sm:$0xff] (!%p1626_p3)  }
  0xa9   : > { %v2099_v14 = vld [vmem:[#allocation6 + $0x48] ss:$12 sps:$4 sm:$0xff] (!%p1626_p3)   ;;  %v2100_v15 = vld [vmem:[#allocation6 + $0x4c] ss:$12 sps:$4 sm:$0xff] (!%p1626_p3)   ;;  %v2102_v17 = vld [vmem:[#allocation6 + $0x124] ss:$12 sps:$4 sm:$0xff] (!%p1626_p3)  }
  0xaa   : > { %1722 = vmatpush3.bf16.msra.mxu0 (!%p1626_p3), %v2091_v6  ;;  %1762 = vmatpush3.bf16.msra.mxu1 (!%p1626_p3), %v2092_v7  ;;  %v2101_v16 = vld [vmem:[#allocation6 + $0x120] ss:$12 sps:$4 sm:$0xff] (!%p1626_p3)   ;;  %v2104_v19 = vld [vmem:[#allocation6 + $0x64] ss:$12 sps:$4 sm:$0xff] (!%p1626_p3)   ;;  %v2106_v21 = vld [vmem:[#allocation6 + $0x13c] ss:$12 sps:$4 sm:$0xff] (!%p1626_p3)  }
  0xab   : > { %1723 = vmatprep.subr.bf16.mxu0 (!%p1626_p3), %v2093_v8  ;;  %1763 = vmatprep.subr.bf16.mxu1 (!%p1626_p3), %v2094_v9  ;;  %v2103_v18 = vld [vmem:[#allocation6 + $0x60] ss:$12 sps:$4 sm:$0xff] (!%p1626_p3)   ;;  %v2105_v20 = vld [vmem:[#allocation6 + $0x138] ss:$12 sps:$4 sm:$0xff] (!%p1626_p3)   ;;  %v2108_v23 = vld [vmem:[#allocation6 + $0x7c] ss:$12 sps:$4 sm:$0xff] (!%p1626_p3)  }
  0xac   : > { %v2107_v22 = vld [vmem:[#allocation6 + $0x78] ss:$12 sps:$4 sm:$0xff]   ;;  %v2109_v24 = vld [vmem:[#allocation6 + $0x150] ss:$12 sps:$4 sm:$0xff]   ;;  %v2110_v25 = vld [vmem:[#allocation6 + $0x154] ss:$12 sps:$4 sm:$0xff]  }
  0xad   : > { %v2111_v26 = vld [vmem:[#allocation6 + $0x90] ss:$12 sps:$4 sm:$0xff]   ;;  %v2112_v27 = vld [vmem:[#allocation6 + $0x94] ss:$12 sps:$4 sm:$0xff]   ;;  %v2114_v29 = vld [vmem:[#allocation6 + $0x16c] ss:$12 sps:$4 sm:$0xff]  }
  0xae   : > { %1724 = vmatpush3.bf16.msra.mxu0 %v2095_v10  ;;  %1764 = vmatpush3.bf16.msra.mxu1 %v2096_v11  ;;  %v2113_v28 = vld [vmem:[#allocation6 + $0x168] ss:$12 sps:$4 sm:$0xff]   ;;  %v2116_v31 = vld [vmem:[#allocation6 + $0xac] ss:$12 sps:$4 sm:$0xff]   ;;  %v2129_v42 = vld [vmem:[#allocation6 + $0x110] ss:$12 sps:$4 sm:$0xff]  }
  0xaf   : > { %1725 = vmatprep.subr.bf16.mxu0 %v2097_v12  ;;  %1765 = vmatprep.subr.bf16.mxu1 %v2098_v13  ;;  %v2115_v30 = vld [vmem:[#allocation6 + $0xa8] ss:$12 sps:$4 sm:$0xff]   ;;  %v2820_v32 = vld [vmem:[%s2788_s17 + $0x4] ss:$8 sps:$4 sm:$0xff]   ;;  %v2126_v39 = vld [vmem:[%s2788_s17 + $0x10] ss:$8 sps:$4 sm:$0xff]  }
  0xb0   : > { %v2823_v33 = vld [vmem:[%s2788_s17] ss:$8 sps:$4 sm:$0xff]   ;;  %545 = vmatprep.mubr.bf16.mxu0 %v2820_v32  ;;  %793 = vmatprep.mubr.bf16.mxu1 %v2820_v32  ;;  %v2124_v38 = vld [vmem:[%s2788_s17 + $0x14] ss:$8 sps:$4 sm:$0xff]   ;;  %v2127_v40 = vld [vmem:[#allocation6 + $0xf8] ss:$12 sps:$4 sm:$0xff]  }
  0xb1   : > { %v2120_v34 = vld [vmem:[#allocation6 + $0xc8] ss:$12 sps:$4 sm:$0xff]   ;;  %v2122_v36 = vld [vmem:[#allocation6 + $0xe0] ss:$12 sps:$4 sm:$0xff]   ;;  %v2128_v41 = vld [vmem:[#allocation6 + $0x38] ss:$12 sps:$4 sm:$0xff]  }
  0xb2   : > { %1726 = vmatpush3.bf16.msra.mxu0 %v2099_v14  ;;  %1766 = vmatpush3.bf16.msra.mxu1 %v2100_v15  ;;  %v2121_v35 = vld [vmem:[#allocation6 + $0x8] ss:$12 sps:$4 sm:$0xff]   ;;  %v2123_v37 = vld [vmem:[#allocation6 + $0x20] ss:$12 sps:$4 sm:$0xff]   ;;  %v2130_v44 = vld [vmem:[#allocation6 + $0x50] ss:$12 sps:$4 sm:$0xff]  }
  0xb3   : > { %1727 = vmatprep.subr.bf16.mxu0 %v2101_v16  ;;  %1767 = vmatprep.subr.bf16.mxu1 %v2102_v17  ;;  %v2131_v43 = vld [vmem:[%s2788_s17 + $0x24] ss:$8 sps:$4 sm:$0xff]   ;;  %v2134_v45 = vld [vmem:[#allocation6 + $0x128] ss:$12 sps:$4 sm:$0xff]   ;;  %v2140_v52 = vld [vmem:[%s2788_s17 + $0x30] ss:$8 sps:$4 sm:$0xff]  }
  0xb4   : > { %v2133_v46 = vld [vmem:[%s2788_s17 + $0x20] ss:$8 sps:$4 sm:$0xff]   ;;  %v2138_v47 = vld [vmem:[%s2788_s17 + $0x34] ss:$8 sps:$4 sm:$0xff]   ;;  %v2141_v51 = vld [vmem:[#allocation6 + $0x158] ss:$12 sps:$4 sm:$0xff]  }
  0xb5   : > { %v2135_v48 = vld [vmem:[#allocation6 + $0x68] ss:$12 sps:$4 sm:$0xff]   ;;  %v2136_v49 = vld [vmem:[#allocation6 + $0x140] ss:$12 sps:$4 sm:$0xff]   ;;  %v2142_v53 = vld [vmem:[#allocation6 + $0x98] ss:$12 sps:$4 sm:$0xff]  }
  0xb6   : > { %1728 = vmatpush3.bf16.msra.mxu0 %v2103_v18  ;;  %1768 = vmatpush3.bf16.msra.mxu1 %v2104_v19  ;;  %v2137_v50 = vld [vmem:[#allocation6 + $0x80] ss:$12 sps:$4 sm:$0xff]   ;;  %v2143_v54 = vld [vmem:[#allocation6 + $0x170] ss:$12 sps:$4 sm:$0xff]  }
  0xb7   : > { %1729 = vmatprep.subr.bf16.mxu0 %v2105_v20  ;;  %1769 = vmatprep.subr.bf16.mxu1 %v2106_v21  ;;  %v2144_v55 = vld [vmem:[#allocation6 + $0xb0] ss:$12 sps:$4 sm:$0xff]   ;;  %v2840_v58 = vld [vmem:[%s3127_s2] ss:$0 sm:$0xff]  ;;  %v2845_v61 = vld [vmem:[%s3127_s2 + $0x1] ss:$0 sm:$0xff] }
  0xba   : > { %1730 = vmatpush3.bf16.msra.mxu0 %v2107_v22  ;;  %1770 = vmatpush3.bf16.msra.mxu1 %v2108_v23 }
  0xbb   : > { %1731 = vmatprep.subr.bf16.mxu0 %v2109_v24  ;;  %1771 = vmatprep.subr.bf16.mxu1 %v2110_v25 }
  0xbe   : > { %1732 = vmatpush3.bf16.msra.mxu0 %v2111_v26  ;;  %1772 = vmatpush3.bf16.msra.mxu1 %v2112_v27 }
  0xbf   : > { %1733 = vmatprep.subr.bf16.mxu0 %v2113_v28  ;;  %1773 = vmatprep.subr.bf16.mxu1 %v2114_v29 }
  0xc2   : > { %1734 = vmatpush3.bf16.msra.mxu0 %v2115_v30  ;;  %1774 = vmatpush3.bf16.msra.mxu1 %v2116_v31 }
  0xc3   : > { %1799 = vmatprep.subr.bf16.mxu0 %v2120_v34  ;;  %1915 = vmatprep.subr.bf16.mxu1 %v2120_v34 }
  0xc5   : > { %546 = vmatmul.mubr.bf16.vlgmr.msra.gmra.mrb[0].mxu0 %v2823_v33  ;;  %794 = vmatmul.mubr.bf16.vlgmr.msra.gmra.mrb[0].mxu1 %v2823_v33 }
  0xc6   : > { %1800 = vmatpush3.bf16.msra.mxu0 %v2121_v35  ;;  %1923 = vmatpush3.bf16.msra.mxu1 %v2121_v35 }
  0xc7   : > { %1801 = vmatprep.subr.bf16.mxu0 %v2122_v36  ;;  %1916 = vmatprep.subr.bf16.mxu1 %v2122_v36 }
  0xc8   : > { %553 = vmatprep.mubr.bf16.mxu0 %v2124_v38  ;;  %801 = vmatprep.mubr.bf16.mxu1 %v2124_v38 }
  0xca   : > { %1802 = vmatpush3.bf16.msra.mxu0 %v2123_v37  ;;  %1924 = vmatpush3.bf16.msra.mxu1 %v2123_v37 }
  0xcb   : > { %1803 = vmatprep.subr.bf16.mxu0 %v2127_v40  ;;  %1917 = vmatprep.subr.bf16.mxu1 %v2127_v40 }
  0xcd   : > { %554 = vmatmul.mubr.bf16.gmra.mrb[4].mxu0 %v2126_v39  ;;  %802 = vmatmul.mubr.bf16.gmra.mrb[4].mxu1 %v2126_v39 }
  0xce   : > { %1804 = vmatpush3.bf16.msra.mxu0 %v2128_v41  ;;  %561 = vmatprep.mubr.bf16.mxu0 %v2131_v43 }
  0xcf   : > { %1925 = vmatpush3.bf16.msra.mxu1 %v2128_v41  ;;  %1805 = vmatprep.subr.bf16.mxu0 %v2129_v42 }
  0xd0   : > { %1918 = vmatprep.subr.bf16.mxu1 %v2129_v42  ;;  %809 = vmatprep.mubr.bf16.mxu1 %v2131_v43 }
  0xd2   : > { %1806 = vmatpush3.bf16.msra.mxu0 %v2130_v44 }
  0xd3   : > { %1926 = vmatpush3.bf16.msra.mxu1 %v2130_v44  ;;  %1807 = vmatprep.subr.bf16.mxu0 %v2134_v45 }
  0xd4   : > { %1919 = vmatprep.subr.bf16.mxu1 %v2134_v45 }
  0xd5   : > { %562 = vmatmul.mubr.bf16.gmra.mrb[8].mxu0 %v2133_v46  ;;  %810 = vmatmul.mubr.bf16.gmra.mrb[8].mxu1 %v2133_v46 }
  0xd6   : > { %569 = vmatprep.mubr.bf16.mxu0 %v2138_v47  ;;  %1808 = vmatpush3.bf16.msra.mxu0 %v2135_v48 }
  0xd7   : > { %817 = vmatprep.mubr.bf16.mxu1 %v2138_v47  ;;  %1927 = vmatpush3.bf16.msra.mxu1 %v2135_v48 }
  0xd8   : > { %1809 = vmatprep.subr.bf16.mxu0 %v2136_v49  ;;  %1920 = vmatprep.subr.bf16.mxu1 %v2136_v49 }
  0xda   : > { %1810 = vmatpush3.bf16.msra.mxu0 %v2137_v50 }
  0xdb   : > { %1928 = vmatpush3.bf16.msra.mxu1 %v2137_v50  ;;  %1811 = vmatprep.subr.bf16.mxu0 %v2141_v51 }
  0xdc   : > { %1921 = vmatprep.subr.bf16.mxu1 %v2141_v51 }
  0xdd   : > { %570 = vmatmul.mubr.bf16.gmra.mrb[12].mxu0 %v2140_v52  ;;  %818 = vmatmul.mubr.bf16.gmra.mrb[12].mxu1 %v2140_v52 }
  0xde   : > { %1041 = vmatprep.mubr.bf16.mxu0 %v2820_v32  ;;  %1812 = vmatpush3.bf16.msra.mxu0 %v2142_v53 }
  0xdf   : > { %1057 = vmatprep.mubr.bf16.mxu1 %v2131_v43  ;;  %1929 = vmatpush3.bf16.msra.mxu1 %v2142_v53 }
  0xe0   : > { %1813 = vmatprep.subr.bf16.mxu0 %v2143_v54  ;;  %1922 = vmatprep.subr.bf16.mxu1 %v2143_v54 }
  0xe2   : > { %1814 = vmatpush3.bf16.msra.mxu0 %v2144_v55 }
  0xe3   : > { %1930 = vmatpush3.bf16.msra.mxu1 %v2144_v55 }
  0xe5   : > { %1042 = vmatmul.mubr.bf16.vlgmr.msra.gmra.mrb[16].mxu0 %v2823_v33 }
  0xe6   : > { %1058 = vmatmul.mubr.bf16.vlgmr.msra.gmra.mrb[16].mxu1 %v2133_v46  ;;  %1049 = vmatprep.mubr.bf16.mxu0 %v2124_v38 }
  0xe7   : > { %1065 = vmatprep.mubr.bf16.mxu1 %v2138_v47 }
  0xed   : > { %1050 = vmatmul.mubr.bf16.gmra.mrb[20].mxu0 %v2126_v39 }
  0xee   : > { %1066 = vmatmul.mubr.bf16.gmra.mrb[20].mxu1 %v2140_v52 }
 0x198   : > { %v1735_v56 = vpop.f32.mrb[0].mxu0  ;;  %v1775_v57 = vpop.f32.mrb[0].mxu1 }
 0x199   : > { %v1736_v59 = vpop.f32.mrb[1].mxu0  ;;  %v1776_v62 = vpop.f32.mrb[1].mxu1 }
 0x19a   : > { %v1737_v60 = vadd.f32 %v1736_v59, %v1735_v56  ;;  %v1738_v63 = vpop.f32.mrb[2].mxu0  ;;  %v1777_v0 = vadd.f32 %v1776_v62, %v1775_v57  ;;  %v1778_v1 = vpop.f32.mrb[2].mxu1 }
 0x19b   : > { %v1739_v2 = vpop.f32.mrb[3].mxu0  ;;  %v1779_v5 = vpop.f32.mrb[3].mxu1 }
 0x19c   : > { %v548_v3 = vadd.f32 %v1737_v60, %v2840_v58  ;;  %v1740_v4 = vadd.f32 %v1739_v2, %v1738_v63  ;;  %v796_v6 = vadd.f32 %v1777_v0, %v2845_v61  ;;  %v1780_v7 = vadd.f32 %v1779_v5, %v1778_v1 }
 0x19e   : > { %v586_v8 = vmul.f32 0.70710677, %v548_v3  ;;  %v551_v9 = vadd.f32 %v1740_v4, %v2840_v58  ;;  %v834_v10 = vmul.f32 0.70710677, %v796_v6  ;;  %v799_v11 = vadd.f32 %v1780_v7, %v2845_v61 }
 0x19f   : > { %v578_v47 = vmul.f32 0.5, %v548_v3  ;;  %v826_v57 = vmul.f32 0.5, %v796_v6 }
 0x1a0   : > { %2145 = verf.f32 %v586_v8  ;;  %v587_v12 = vmul.f32 0.70710677, %v551_v9  ;;  %v1741_v13 = vpop.f32.mrb[4].mxu0  ;;  %v835_v14 = vmul.f32 0.70710677, %v799_v11  ;;  %v1781_v15 = vpop.f32.mrb[4].mxu1 }
 0x1a1   : > { %2147 = verf.f32 %v834_v10  ;;  %v1742_v16 = vpop.f32.mrb[5].mxu0  ;;  %v1782_v18 = vpop.f32.mrb[5].mxu1  ;;  %v579_v53 = vmul.f32 0.5, %v551_v9  ;;  %v827_v59 = vmul.f32 0.5, %v799_v11 }
 0x1a2   : > { %2149 = verf.f32 %v587_v12  ;;  %v1743_v17 = vadd.f32 %v1742_v16, %v1741_v13  ;;  %v1744_v19 = vpop.f32.mrb[6].mxu0  ;;  %v1783_v20 = vadd.f32 %v1782_v18, %v1781_v15  ;;  %v1784_v21 = vpop.f32.mrb[6].mxu1 }
 0x1a3   : > { %2151 = verf.f32 %v835_v14  ;;  %v1745_v22 = vpop.f32.mrb[7].mxu0  ;;  %v1785_v25 = vpop.f32.mrb[7].mxu1 }
 0x1a4   : > { %v2852_v23 = vadd.f32 %v1743_v17, %v2840_v58  ;;  %v1746_v24 = vadd.f32 %v1745_v22, %v1744_v19  ;;  %v2855_v26 = vadd.f32 %v1783_v20, %v2845_v61  ;;  %v1786_v27 = vadd.f32 %v1785_v25, %v1784_v21 }
 0x1a6   : > { %v588_v28 = vmul.f32 0.70710677, %v2852_v23  ;;  %v2859_v29 = vadd.f32 %v1746_v24, %v2840_v58  ;;  %v836_v30 = vmul.f32 0.70710677, %v2855_v26  ;;  %v2863_v31 = vadd.f32 %v1786_v27, %v2845_v61 }
 0x1a7   : > { %v580_v18 = vmul.f32 0.5, %v2852_v23 }
 0x1a8   : > { %2153 = verf.f32 %v588_v28  ;;  %v589_v32 = vmul.f32 0.70710677, %v2859_v29  ;;  %v1747_v33 = vpop.f32.mrb[8].mxu0  ;;  %v837_v34 = vmul.f32 0.70710677, %v2863_v31  ;;  %v1787_v35 = vpop.f32.mrb[8].mxu1 }
 0x1a9   : > { %2155 = verf.f32 %v836_v30  ;;  %v1748_v36 = vpop.f32.mrb[9].mxu0  ;;  %v1788_v39 = vpop.f32.mrb[9].mxu1 }
 0x1aa   : > { %v2146_v37 = vpop.eup %2145  ;;  %2157 = verf.f32 %v589_v32  ;;  %v1749_v38 = vadd.f32 %v1748_v36, %v1747_v33  ;;  %v1750_v40 = vpop.f32.mrb[10].mxu0  ;;  %v1789_v43 = vadd.f32 %v1788_v39, %v1787_v35  ;;  %v581_v33 = vmul.f32 0.5, %v2859_v29 }
 0x1ab   : > { %v2148_v41 = vpop.eup %2147  ;;  %v602_v42 = vadd.f32 1.0, %v2146_v37  ;;  %2159 = verf.f32 %v837_v34  ;;  %v1790_v44 = vpop.f32.mrb[10].mxu1  ;;  %v828_v36 = vmul.f32 0.5, %v2855_v26  ;;  %v829_v37 = vmul.f32 0.5, %v2863_v31 }
 0x1ac   : > { %v1751_v45 = vpop.f32.mrb[11].mxu0  ;;  %v2150_v46 = vpop.eup %2149  ;;  %v850_v48 = vadd.f32 1.0, %v2148_v41  ;;  %v2868_v49 = vadd.f32 %v1749_v38, %v2840_v58  ;;  %v2871_v55 = vadd.f32 %v1789_v43, %v2845_v61 }
 0x1ad   : > { %v1752_v50 = vadd.f32 %v1751_v45, %v1750_v40  ;;  %v1791_v51 = vpop.f32.mrb[11].mxu1  ;;  %v2152_v52 = vpop.eup %2151  ;;  %v603_v54 = vadd.f32 1.0, %v2150_v46  ;;  %v610_v63 = vmul.f32 %v602_v42, %v578_v47 }
 0x1ae   : > { %v1792_v56 = vadd.f32 %v1791_v51, %v1790_v44  ;;  %v851_v60 = vadd.f32 1.0, %v2152_v52  ;;  %v590_v62 = vmul.f32 0.70710677, %v2868_v49  ;;  %v838_v1 = vmul.f32 0.70710677, %v2871_v55 }
 0x1af   : > { %v611_v0 = vmul.f32 %v603_v54, %v579_v53  ;;  %v2876_v2 = vadd.f32 %v1752_v50, %v2840_v58  ;;  %v858_v3 = vmul.f32 %v850_v48, %v826_v57  ;;  %v582_v57 = vmul.f32 0.5, %v2868_v49 }
 0x1b0   : > { %v859_v4 = vmul.f32 %v851_v60, %v827_v59  ;;  %2161 = verf.f32 %v590_v62  ;;  %v2879_v5 = vadd.f32 %v1792_v56, %v2845_v61  ;;  %v1753_v7 = vpop.f32.mrb[12].mxu0  ;;  %v1793_v9 = vpop.f32.mrb[12].mxu1 }
 0x1b1   : > { %v618_v8 = vpack.c.bf16 %v611_v0, %v610_v63  ;;  %2163 = verf.f32 %v838_v1  ;;  %v591_v6 = vmul.f32 0.70710677, %v2876_v2  ;;  %v1754_v10 = vpop.f32.mrb[13].mxu0  ;;  %v1794_v15 = vpop.f32.mrb[13].mxu1  ;;  %v830_v1 = vmul.f32 0.5, %v2871_v55 }
 0x1b2   : > { %v2154_v11 = vpop.eup %2153  ;;  %v866_v12 = vpack.c.bf16 %v859_v4, %v858_v3  ;;  %v839_v13 = vmul.f32 0.70710677, %v2879_v5  ;;  %v1755_v14 = vadd.f32 %v1754_v10, %v1753_v7  ;;  %v1756_v16 = vpop.f32.mrb[14].mxu0  ;;  %v1795_v20 = vadd.f32 %v1794_v15, %v1793_v9 }
 0x1b3   : > { %v2156_v17 = vpop.eup %2155  ;;  %622 = vst [vmem:[#allocation2] sm:$0xff] %v618_v8  ;;  %v604_v19 = vadd.f32 1.0, %v2154_v11  ;;  %2165 = verf.f32 %v591_v6  ;;  %v1796_v21 = vpop.f32.mrb[14].mxu1  ;;  %v583_v9 = vmul.f32 0.5, %v2876_v2 }
 0x1b4   : > { %v1757_v22 = vpop.f32.mrb[15].mxu0  ;;  %v2158_v24 = vpop.eup %2157  ;;  %870 = vst [vmem:[#allocation2 + $0x8] sm:$0xff] %v866_v12  ;;  %v852_v25 = vadd.f32 1.0, %v2156_v17  ;;  %2167 = verf.f32 %v839_v13  ;;  %v2885_v27 = vadd.f32 %v1755_v14, %v2840_v58  ;;  %v2889_v23 = vadd.f32 %v1795_v20, %v2845_v61 }
 0x1b5   : > { %v1758_v28 = vadd.f32 %v1757_v22, %v1756_v16  ;;  %v1797_v30 = vpop.f32.mrb[15].mxu1  ;;  %v2160_v32 = vpop.eup %2159  ;;  %v605_v34 = vadd.f32 1.0, %v2158_v24  ;;  %v612_v40 = vmul.f32 %v604_v19, %v580_v18  ;;  %v831_v12 = vmul.f32 0.5, %v2879_v5 }
 0x1b6   : > { %v1798_v35 = vadd.f32 %v1797_v30, %v1796_v21  ;;  %v853_v38 = vadd.f32 1.0, %v2160_v32  ;;  %v592_v39 = vmul.f32 0.70710677, %v2885_v27  ;;  %v840_v42 = vmul.f32 0.70710677, %v2889_v23 }
 0x1b7   : > { %v613_v41 = vmul.f32 %v605_v34, %v581_v33  ;;  %v2896_v43 = vadd.f32 %v1758_v28, %v2840_v58  ;;  %v860_v29 = vmul.f32 %v852_v25, %v828_v36  ;;  %v2906_v58 = vld [vmem:[%s3127_s2 + $0x2] ss:$0 sm:$0xff]  ;;  %v584_v36 = vmul.f32 0.5, %v2885_v27 }
 0x1b8   : > { %v861_v44 = vmul.f32 %v853_v38, %v829_v37  ;;  %2169 = verf.f32 %v592_v39  ;;  %v2899_v45 = vadd.f32 %v1798_v35, %v2845_v61  ;;  %v1815_v31 = vpop.f32.mrb[16].mxu0 }
 0x1b9   : > { %v619_v46 = vpack.c.bf16 %v613_v41, %v612_v40  ;;  %2171 = verf.f32 %v840_v42  ;;  %v593_v26 = vmul.f32 0.70710677, %v2896_v43  ;;  %v1827_v51 = vpop.f32.mrb[16].mxu1  ;;  %v1816_v52 = vpop.f32.mrb[17].mxu0  ;;  %v832_v42 = vmul.f32 0.5, %v2889_v23 }
 0x1ba   : > { %v2162_v47 = vpop.eup %2161  ;;  %v867_v48 = vpack.c.bf16 %v861_v44, %v860_v29  ;;  %v841_v50 = vmul.f32 0.70710677, %v2899_v45  ;;  %v1817_v61 = vadd.f32 %v1816_v52, %v1815_v31  ;;  %v1828_v54 = vpop.f32.mrb[17].mxu1 }
 0x1bb   : > { %v2164_v53 = vpop.eup %2163  ;;  %623 = vst [vmem:[#allocation2 + $0x18] sm:$0xff] %v619_v46  ;;  %2173 = verf.f32 %v593_v26  ;;  %v1818_v56 = vpop.f32.mrb[18].mxu0  ;;  %v606_v59 = vadd.f32 1.0, %v2162_v47  ;;  %v1829_v60 = vadd.f32 %v1828_v54, %v1827_v51  ;;  %v585_v47 = vmul.f32 0.5, %v2896_v43 }
 0x1bc   : > { %871 = vst [vmem:[#allocation2 + $0x20] sm:$0xff] %v867_v48  ;;  %2175 = verf.f32 %v841_v50  ;;  %v1830_v62 = vpop.f32.mrb[18].mxu1  ;;  %v1819_v63 = vpop.f32.mrb[19].mxu0  ;;  %v854_v3 = vadd.f32 1.0, %v2164_v53  ;;  %v2911_v4 = vadd.f32 %v1817_v61, %v2906_v58  ;;  %v833_v51 = vmul.f32 0.5, %v2899_v45 }
 0x1bd   : > { %v2166_v0 = vpop.eup %2165  ;;  %v1820_v7 = vadd.f32 %v1819_v63, %v1818_v56  ;;  %v1831_v8 = vpop.f32.mrb[19].mxu1  ;;  %v2915_v49 = vadd.f32 %v1829_v60, %v2906_v58  ;;  %v614_v15 = vmul.f32 %v606_v59, %v582_v57 }
 0x1be   : > { %v2168_v6 = vpop.eup %2167  ;;  %v607_v10 = vadd.f32 1.0, %v2166_v0  ;;  %v1832_v11 = vadd.f32 %v1831_v8, %v1830_v62  ;;  %v1082_v14 = vmul.f32 0.70710677, %v2911_v4  ;;  %v862_v2 = vmul.f32 %v854_v3, %v830_v1 }
 0x1bf   : > { %v855_v13 = vadd.f32 1.0, %v2168_v6  ;;  %v2920_v55 = vadd.f32 %v1820_v7, %v2906_v58  ;;  %v1086_v17 = vmul.f32 0.70710677, %v2915_v49 }
 0x1c0   : > { %v615_v16 = vmul.f32 %v607_v10, %v583_v9  ;;  %v2924_v18 = vadd.f32 %v1832_v11, %v2906_v58  ;;  %2177 = verf.f32 %v1082_v14  ;;  %v1821_v21 = vpop.f32.mrb[20].mxu0  ;;  %v1078_v11 = vmul.f32 0.5, %v2915_v49 }
 0x1c1   : > { %v863_v19 = vmul.f32 %v855_v13, %v831_v12  ;;  %v1083_v20 = vmul.f32 0.70710677, %v2920_v55  ;;  %2179 = verf.f32 %v1086_v17  ;;  %v1833_v25 = vpop.f32.mrb[20].mxu1  ;;  %v1822_v28 = vpop.f32.mrb[21].mxu0  ;;  %v1075_v9 = vmul.f32 0.5, %v2920_v55 }
 0x1c2   : > { %v2170_v5 = vpop.eup %2169  ;;  %v620_v22 = vpack.c.bf16 %v615_v16, %v614_v15  ;;  %v1087_v24 = vmul.f32 0.70710677, %v2924_v18  ;;  %v1823_v33 = vadd.f32 %v1822_v28, %v1821_v21  ;;  %v1834_v34 = vpop.f32.mrb[21].mxu1  ;;  %v1079_v12 = vmul.f32 0.5, %v2924_v18 }
 0x1c3   : > { %v2172_v30 = vpop.eup %2171  ;;  %v868_v32 = vpack.c.bf16 %v863_v19, %v862_v2  ;;  %2181 = verf.f32 %v1083_v20  ;;  %v1824_v35 = vpop.f32.mrb[22].mxu0  ;;  %v608_v37 = vadd.f32 1.0, %v2170_v5  ;;  %v1835_v38 = vadd.f32 %v1834_v34, %v1833_v25 }
 0x1c4   : > { %624 = vst [vmem:[#allocation2 + $0x30] sm:$0xff] %v620_v22  ;;  %2183 = verf.f32 %v1087_v24  ;;  %v1836_v39 = vpop.f32.mrb[22].mxu1  ;;  %v1825_v40 = vpop.f32.mrb[23].mxu0  ;;  %v856_v29 = vadd.f32 1.0, %v2172_v30  ;;  %v1052_v44 = vadd.f32 %v1823_v33, %v2906_v58 }
 0x1c5   : > { %v2174_v41 = vpop.eup %2173  ;;  %872 = vst [vmem:[#allocation2 + $0x38] sm:$0xff] %v868_v32  ;;  %v1826_v46 = vadd.f32 %v1825_v40, %v1824_v35  ;;  %v1837_v26 = vpop.f32.mrb[23].mxu1  ;;  %v1068_v27 = vadd.f32 %v1835_v38, %v2906_v58  ;;  %v616_v54 = vmul.f32 %v608_v37, %v584_v36 }
 0x1c6   : > { %v2176_v31 = vpop.eup %2175  ;;  %v609_v48 = vadd.f32 1.0, %v2174_v41  ;;  %v1838_v50 = vadd.f32 %v1837_v26, %v1836_v39  ;;  %v1084_v53 = vmul.f32 0.70710677, %v1052_v44  ;;  %v864_v59 = vmul.f32 %v856_v29, %v832_v42 }
 0x1c7   : > { %v857_v52 = vadd.f32 1.0, %v2176_v31  ;;  %v1055_v61 = vadd.f32 %v1826_v46, %v2906_v58  ;;  %v1088_v56 = vmul.f32 0.70710677, %v1068_v27  ;;  %v1076_v24 = vmul.f32 0.5, %v1052_v44 }
 0x1c8   : > { %v617_v23 = vmul.f32 %v609_v48, %v585_v47  ;;  %v1071_v57 = vadd.f32 %v1838_v50, %v2906_v58  ;;  %2185 = verf.f32 %v1084_v53  ;;  %v1074_v58 = vmul.f32 0.5, %v2911_v4 }
 0x1c9   : > { %v865_v60 = vmul.f32 %v857_v52, %v833_v51  ;;  %v1085_v62 = vmul.f32 0.70710677, %v1055_v61  ;;  %2187 = verf.f32 %v1088_v56  ;;  %v1077_v25 = vmul.f32 0.5, %v1055_v61 }
 0x1ca   : > { %v621_v43 = vpack.c.bf16 %v617_v23, %v616_v54  ;;  %v1089_v63 = vmul.f32 0.70710677, %v1071_v57  ;;  %v2178_v0 = vpop.eup %2177  ;;  %v1080_v28 = vmul.f32 0.5, %v1068_v27  ;;  %v1081_v18 = vmul.f32 0.5, %v1071_v57 }
 0x1cb   : > { %v869_v1 = vpack.c.bf16 %v865_v60, %v864_v59  ;;  %2189 = verf.f32 %v1085_v62  ;;  %v2180_v45 = vpop.eup %2179  ;;  %v1098_v3 = vadd.f32 1.0, %v2178_v0 }
 0x1cc   : > { %625 = vst [vmem:[#allocation2 + $0x48] sm:$0xff] %v621_v43  ;;  %2191 = verf.f32 %v1089_v63  ;;  %v1102_v8 = vadd.f32 1.0, %v2180_v45 }
 0x1cd   : > { %v2182_v7 = vpop.eup %2181  ;;  %873 = vst [vmem:[#allocation2 + $0x50] sm:$0xff] %v869_v1  ;;  %v1106_v14 = vmul.f32 %v1098_v3, %v1074_v58 }
 0x1ce   : > { %v2184_v6 = vpop.eup %2183  ;;  %v1099_v10 = vadd.f32 1.0, %v2182_v7  ;;  %v1110_v16 = vmul.f32 %v1102_v8, %v1078_v11 }
 0x1cf   : > { %v1103_v13 = vadd.f32 1.0, %v2184_v6 }
 0x1d0   : > { %v1107_v15 = vmul.f32 %v1099_v10, %v1075_v9 }
 0x1d1   : > { %v1111_v17 = vmul.f32 %v1103_v13, %v1079_v12 }
 0x1d2   : > { %v1114_v2 = vpack.c.bf16 %v1107_v15, %v1106_v14  ;;  %v2186_v19 = vpop.eup %2185 }
 0x1d3   : > { %v1116_v20 = vpack.c.bf16 %v1111_v17, %v1110_v16  ;;  %v2188_v21 = vpop.eup %2187  ;;  %v1100_v5 = vadd.f32 1.0, %v2186_v19 }
 0x1d4   : > { %1118 = vst [vmem:[#allocation2 + $0x10] sm:$0xff] %v1114_v2  ;;  %v1104_v4 = vadd.f32 1.0, %v2188_v21 }
 0x1d5   : > { %v2190_v22 = vpop.eup %2189  ;;  %1120 = vst [vmem:[#allocation2 + $0x40] sm:$0xff] %v1116_v20  ;;  %v1108_v32 = vmul.f32 %v1100_v5, %v1076_v24 }
 0x1d6   : > { %v2192_v55 = vpop.eup %2191  ;;  %v1101_v49 = vadd.f32 1.0, %v2190_v22  ;;  %v1112_v34 = vmul.f32 %v1104_v4, %v1080_v28 }
 0x1d7   : > { %v1105_v30 = vadd.f32 1.0, %v2192_v55 }
 0x1d8   : > { %v1109_v33 = vmul.f32 %v1101_v49, %v1077_v25 }
 0x1d9   : > { %v1113_v35 = vmul.f32 %v1105_v30, %v1081_v18 }
 0x1da   : > { %v1115_v36 = vpack.c.bf16 %v1109_v33, %v1108_v32 }
 0x1db   : > { %v1117_v37 = vpack.c.bf16 %v1113_v35, %v1112_v34 }
 0x1dc   : > { %1119 = vst [vmem:[#allocation2 + $0x28] sm:$0xff] %v1115_v36 }
 0x1dd   : > { %1121 = vst [vmem:[#allocation2 + $0x58] sm:$0xff] %v1117_v37 }
 0x1de PF: > { %v2193_v38 = vld [vmem:[%s2799_s9 + $0x40] sm:$0xff]   ;;  %v2195_v40 = vld [vmem:[%s2799_s9 + $0x48] sm:$0xff]   ;;  %v2198_v29 = vld [vmem:[%s2799_s9 + $0x50] sm:$0xff]   ;;  %s3130_s10 = sld [smem:[#allocation16_spill]]  ;;  %s1487_s29 = sshll.u32 %s2816_s13, 4  ;;  %s2983_s29 = int_to_ptr.vmem [resolvable:$true] %s1487_s29 }
 0x1df   : > { %v2194_v39 = vld [vmem:[%s2799_s9] sm:$0xff]   ;;  %1839 = vmatprep.subr.bf16.mxu0 %v2193_v38  ;;  %v2197_v42 = vld [vmem:[%s2799_s9 + $0x8] sm:$0xff]   ;;  %v2200_v46 = vld [vmem:[%s2799_s9 + $0x10] sm:$0xff]   ;;  %s3131_s24 = sld [smem:[#allocation28_spill]]  ;;  %s2989_s0 = scalar_lea.sflag [#allocation5], %s317_s15 }
 0x1e0   : > { %1840 = vmatpush3.bf16.msra.mxu0 %v2194_v39  ;;  %v2196_v41 = vld [vmem:[%s2799_s9 + $0x80] sm:$0xff]   ;;  %v2199_v44 = vld [vmem:[%s2799_s9 + $0x88] sm:$0xff]   ;;  %v2201_v26 = vld [vmem:[%s2799_s9 + $0x58] sm:$0xff]   ;;  %s2305_s28 = scalar_lea.vmem %s2983_s29, 1024  ;;  %p3133_p9 = scmp.ne.s32.totalorder %s3111_s21, 0 }
 0x1e1   : > { %1841 = vmatprep.subr.bf16.mxu0 %v2195_v40  ;;  %1891 = vmatprep.subr.bf16.mxu1 %v2196_v41  ;;  %v2202_v31 = vld [vmem:[%s2799_s9 + $0x90] sm:$0xff]   ;;  %v2203_v47 = vld [vmem:[%s2799_s9 + $0x18] sm:$0xff]   ;;  %v2204_v48 = vld [vmem:[%s2799_s9 + $0x60] sm:$0xff]   ;;  %p2306_p11 = scmp.ne.s32.totalorder %s2983_s29, %s2305_s28  ;;  %s2470_s26 = smov [#allocation9]  }
 0x1e2   : > { %1892 = vmatpush3.bf16.msra.mxu1 %v2196_v41  ;;  %v2205_v27 = vld [vmem:[%s2799_s9 + $0x98] sm:$0xff]   ;;  %v2206_v50 = vld [vmem:[%s2799_s9 + $0x20] sm:$0xff]   ;;  %v2207_v52 = vld [vmem:[%s2799_s9 + $0x68] sm:$0xff]   ;;  %s2309_s17 = sshll.u32 %s2470_s26, 4  ;;  %s2310_s17 = int_to_ptr.vmem [resolvable:$false] %s2309_s17 }
 0x1e3   : > { %1893 = vmatprep.subr.bf16.mxu1 %v2199_v44  ;;  %v2208_v51 = vld [vmem:[%s2799_s9 + $0xa0] sm:$0xff]   ;;  %v2209_v53 = vld [vmem:[%s2799_s9 + $0x28] sm:$0xff]   ;;  %v2210_v54 = vld [vmem:[%s2799_s9 + $0x70] sm:$0xff]   ;;  %p2307_p10 = pnand %p2306_p11, %p3133_p9  ;;  %s2311_s23 = scalar_lea.vmem %s2310_s17, 2048 }
 0x1e4   : > { %1842 = vmatpush3.bf16.msra.mxu0 %v2197_v42  ;;  %v2211_v61 = vld [vmem:[%s2799_s9 + $0xa8] sm:$0xff]   ;;  %v2212_v23 = vld [vmem:[%s2799_s9 + $0x30] sm:$0xff]   ;;  %v2213_v59 = vld [vmem:[%s2799_s9 + $0x78] sm:$0xff]   ;;  %p2312_p1 = scmp.lt.s32.totalorder %s2983_s29, %s2310_s17  ;;  %p2313_p4 = scmp.lt.s32.totalorder %s2311_s23, %s2305_s28 }
 0x1e5   : > { %1843 = vmatprep.subr.bf16.mxu0 %v2198_v29  ;;  %v2214_v56 = vld [vmem:[%s2799_s9 + $0xb0] sm:$0xff]   ;;  %v1123_v57 = vld [vmem:[#allocation2 + $0x8] sm:$0xff]  ;;  %v2215_v62 = vld [vmem:[%s2799_s9 + $0x38] sm:$0xff]   ;;  %s3132_s14 = smov %s3131_s24  ;;  %p2308_p6 = pneg %p2307_p10 }
 0x1e6   : > { %1894 = vmatpush3.bf16.msra.mxu1 %v2199_v44  ;;  %1365 = vmatprep.mubr.bf16.mxu0 %v1123_v57  ;;  %v1124_v60 = vld [vmem:[#allocation2 + $0x10] sm:$0xff]  ;;  %v2216_v43 = vld [vmem:[%s2799_s9 + $0xb8] sm:$0xff]   ;;  %v1122_v63 = vld [vmem:[#allocation2] sm:$0xff]  ;;  %s3129_s9 = sld [smem:[#allocation17_spill]]  ;;  %p2314_p12 = por %p2313_p4, %p2312_p1 }
 0x1e7   : > { %1895 = vmatprep.subr.bf16.mxu1 %v2202_v31  ;;  %1907 = vmatprep.mubr.bf16.mxu1 %v1124_v60  ;;  %v1126_v0 = vld [vmem:[#allocation2 + $0x20] sm:$0xff]  ;;  %v1127_v1 = vld [vmem:[#allocation2 + $0x28] sm:$0xff]  ;;  %v1125_v3 = vld [vmem:[#allocation2 + $0x18] sm:$0xff] }
 0x1e8   : > { %1844 = vmatpush3.bf16.msra.mxu0 %v2200_v46  ;;  %v1130_v45 = vld [vmem:[#allocation2 + $0x40] sm:$0xff]  ;;  %v1129_v7 = vld [vmem:[#allocation2 + $0x38] sm:$0xff]  ;;  %v1128_v6 = vld [vmem:[#allocation2 + $0x30] sm:$0xff]  ;;  %p2315_p8 = pnand %p2314_p12, %p2308_p6 }
 0x1e9   : > { %1845 = vmatprep.subr.bf16.mxu0 %v2201_v26  ;;  %v1133_v8 = vld [vmem:[#allocation2 + $0x58] sm:$0xff]  ;;  %v1132_v58 = vld [vmem:[#allocation2 + $0x50] sm:$0xff]  ;;  %v1131_v9 = vld [vmem:[#allocation2 + $0x48] sm:$0xff] }
 0x1ea   : > { %1896 = vmatpush3.bf16.msra.mxu1 %v2202_v31  ;;  %v1686_v12 = vld [vmem:[%s323_s8] ss:$0 sm:$0xff] }
 0x1eb   : > { %1897 = vmatprep.subr.bf16.mxu1 %v2205_v27 }
 0x1ec   : > { %1846 = vmatpush3.bf16.msra.mxu0 %v2203_v47  ;;  %s1933_s5 = smul.u32 24, %s3129_s9 }
 0x1ed   : > { %1847 = vmatprep.subr.bf16.mxu0 %v2204_v48 }
 0x1ee   : > { %1898 = vmatpush3.bf16.msra.mxu1 %v2205_v27  ;;  %s1484_s30 = sadd.s32 %s3130_s10, %s1933_s5 }
 0x1ef   : > { %1899 = vmatprep.subr.bf16.mxu1 %v2208_v51  ;;  %s1714_s16 = sshll.u32 %s1484_s30, 7 }
 0x1f0   : > { %1848 = vmatpush3.bf16.msra.mxu0 %v2206_v50  ;;  %s2981_s27 = scalar_lea.hbm %s3131_s24, %s1714_s16 }
 0x1f1   : > { %1849 = vmatprep.subr.bf16.mxu0 %v2207_v52 }
 0x1f2   : > { %1900 = vmatpush3.bf16.msra.mxu1 %v2208_v51 }
 0x1f3   : > { %1901 = vmatprep.subr.bf16.mxu1 %v2211_v61 }
 0x1f4   : > { %1850 = vmatpush3.bf16.msra.mxu0 %v2209_v53 }
 0x1f5   : > { %1851 = vmatprep.subr.bf16.mxu0 %v2210_v54 }
 0x1f6   : > { %1902 = vmatpush3.bf16.msra.mxu1 %v2211_v61 }
 0x1f7   : > { %1903 = vmatprep.subr.bf16.mxu1 %v2214_v56 }
 0x1f8   : > { %1852 = vmatpush3.bf16.msra.mxu0 %v2212_v23 }
 0x1f9   : > { %1853 = vmatprep.subr.bf16.mxu0 %v2213_v59 }
 0x1fa   : > { %1904 = vmatpush3.bf16.msra.mxu1 %v2214_v56 }
 0x1fb   : > { %1905 = vmatprep.subr.bf16.mxu1 %v2216_v43 }
 0x1fc   : > { %1854 = vmatpush3.bf16.msra.mxu0 %v2215_v62 }
 0x1fe   : > { %1906 = vmatpush3.bf16.msra.mxu1 %v2216_v43 }
 0x1ff   : > { %1366 = vmatmul.mubr.bf16.vlgmr.msra.gmra.mrb[0].mxu0 %v1122_v63 }
 0x200   : > { %1373 = vmatprep.mubr.bf16.mxu0 %v1126_v0 }
 0x201   : > { %1908 = vmatmul.mubr.bf16.vlgmr.msra.gmra.mrb[0].mxu1 %v1127_v1 }
 0x202   : > { %1911 = vmatprep.mubr.bf16.mxu1 %v1130_v45 }
 0x207   : > { %1374 = vmatmul.mubr.bf16.gmra.mrb[4].mxu0 %v1125_v3 }
 0x208   : > { %1381 = vmatprep.mubr.bf16.mxu0 %v1129_v7 }
 0x209   : > { %1912 = vmatmul.mubr.bf16.gmra.mrb[4].mxu1 %v1133_v8 }
 0x20f   : > { %1382 = vmatmul.mubr.bf16.gmra.mrb[8].mxu0 %v1128_v6 }
 0x210   : > { %1389 = vmatprep.mubr.bf16.mxu0 %v1132_v58 }
 0x217   : > { %1390 = vmatmul.mubr.bf16.gmra.mrb[12].mxu0 %v1131_v9 }
 0x2d2   : > { %v1855_v10 = vpop.f32.mrb[0].mxu0 }
 0x2d3   : > { %v1856_v11 = vpop.f32.mrb[1].mxu0 }
 0x2d4   : > { %v1857_v13 = vadd.f32 %v1856_v11, %v1855_v10  ;;  %v1858_v14 = vpop.f32.mrb[2].mxu0  ;;  %v1909_v16 = vpop.f32.mrb[0].mxu1 }
 0x2d5   : > { %v1859_v15 = vpop.f32.mrb[3].mxu0  ;;  %v1432_v19 = vpop.f32.mrb[1].mxu1 }
 0x2d6   : > { %v1860_v17 = vadd.f32 %v1859_v15, %v1858_v14  ;;  %v1368_v2 = vadd.f32 %v1857_v13, %v1686_v12  ;;  %v1910_v20 = vpop.f32.mrb[2].mxu1 }
 0x2d7   : > { %v1435_v22 = vpop.f32.mrb[3].mxu1 }
 0x2d8   : > { %v1433_v21 = vadd.f32 %v1432_v19, %v1368_v2  ;;  %v1371_v5 = vadd.f32 %v1860_v17, %v1686_v12 }
 0x2da   : > { %1463 = vst [vmem:[%s2816_s13] sm:$0xff] %v1433_v21  ;;  %v1436_v4 = vadd.f32 %v1435_v22, %v1371_v5  ;;  %v1861_v55 = vpop.f32.mrb[4].mxu0 }
 0x2db   : > { %v1862_v24 = vpop.f32.mrb[5].mxu0 }
 0x2dc   : > { %1464 = vst [vmem:[%s2816_s13 + $0x8] sm:$0xff] %v1436_v4  ;;  %v1863_v25 = vadd.f32 %v1862_v24, %v1861_v55  ;;  %v1864_v49 = vpop.f32.mrb[6].mxu0  ;;  %v1913_v18 = vpop.f32.mrb[4].mxu1 }
 0x2dd   : > { %v1865_v28 = vpop.f32.mrb[7].mxu0  ;;  %v1448_v33 = vpop.f32.mrb[5].mxu1 }
 0x2de   : > { %v1376_v30 = vadd.f32 %v1863_v25, %v1686_v12  ;;  %v1866_v32 = vadd.f32 %v1865_v28, %v1864_v49  ;;  %v1914_v34 = vpop.f32.mrb[6].mxu1 }
 0x2df   : > { %v1451_v37 = vpop.f32.mrb[7].mxu1 }
 0x2e0   : > { %v1441_v35 = vadd.f32 %v1909_v16, %v1376_v30  ;;  %v1379_v36 = vadd.f32 %v1866_v32, %v1686_v12 }
 0x2e2   : > { %1465 = vst [vmem:[%s2816_s13 + $0x10] sm:$0xff] %v1441_v35  ;;  %v1444_v38 = vadd.f32 %v1910_v20, %v1379_v36  ;;  %v1867_v39 = vpop.f32.mrb[8].mxu0 }
 0x2e3   : > { %v1868_v40 = vpop.f32.mrb[9].mxu0 }
 0x2e4   : > { %1466 = vst [vmem:[%s2816_s13 + $0x18] sm:$0xff] %v1444_v38  ;;  %v1869_v41 = vadd.f32 %v1868_v40, %v1867_v39  ;;  %v1870_v42 = vpop.f32.mrb[10].mxu0 }
 0x2e5   : > { %v1871_v29 = vpop.f32.mrb[11].mxu0 }
 0x2e6   : > { %v1872_v44 = vadd.f32 %v1871_v29, %v1870_v42  ;;  %v1384_v46 = vadd.f32 %v1869_v41, %v1686_v12 }
 0x2e8   : > { %v1449_v26 = vadd.f32 %v1448_v33, %v1384_v46  ;;  %v1387_v31 = vadd.f32 %v1872_v44, %v1686_v12 }
 0x2ea   : > { %1467 = vst [vmem:[%s2816_s13 + $0x20] sm:$0xff] %v1449_v26  ;;  %v1452_v47 = vadd.f32 %v1451_v37, %v1387_v31  ;;  %v1873_v48 = vpop.f32.mrb[12].mxu0 }
 0x2eb   : > { %v1874_v27 = vpop.f32.mrb[13].mxu0 }
 0x2ec   : > { %1468 = vst [vmem:[%s2816_s13 + $0x28] sm:$0xff] %v1452_v47  ;;  %v1875_v50 = vadd.f32 %v1874_v27, %v1873_v48  ;;  %v1876_v51 = vpop.f32.mrb[14].mxu0 }
 0x2ed   : > { %v1877_v52 = vpop.f32.mrb[15].mxu0 }
 0x2ee   : > { %v1392_v53 = vadd.f32 %v1875_v50, %v1686_v12  ;;  %v1878_v61 = vadd.f32 %v1877_v52, %v1876_v51 }
 0x2f0   : > { %v1457_v54 = vadd.f32 %v1913_v18, %v1392_v53  ;;  %v1395_v23 = vadd.f32 %v1878_v61, %v1686_v12 }
 0x2f2   : > { %1469 = vst [vmem:[%s2816_s13 + $0x30] sm:$0xff] %v1457_v54  ;;  %v1460_v56 = vadd.f32 %v1914_v34, %v1395_v23 }
 0x2f4   : > { %1470 = vst [vmem:[%s2816_s13 + $0x38] sm:$0xff] %v1460_v56 }
 0x2f5   : > { %2318 = shalt.err (!%p2315_p8)
}
 0x2f6   : > { %s2319_s15 = scalar_lea.hbm %s2981_s27, 1024  ;;  %s2323_s9 = scalar_lea.hbm %s3132_s14, 9216 }
 0x2f7   : > { %p2320_p2 = scmp.ne.s32.totalorder %s2981_s27, %s2319_s15  ;;  %p2324_p7 = scmp.lt.u32.totalorder %s2981_s27, %s3132_s14 }
 0x2f8   : > { %p2325_p5 = scmp.lt.u32.totalorder %s2323_s9, %s2319_s15  ;;  %p2327_p11 = scmp.lt.u32.totalorder %s2319_s15, %s2981_s27 }
 0x2f9   : > { %p2321_p0 = pnand %p2320_p2, %p3133_p9 }
 0x2fa   : > { %p2326_p3 = por %p2325_p5, %p2324_p7 }
 0x2fb   : > { %p2322_p13 = pneg %p2321_p0 }
 0x2fc   : > { %p2328_p10 = por %p2327_p11, %p2326_p3 }
 0x2fe   : > { %p2329_p6 = pnand %p2328_p10, %p2322_p13 }
 0x300   : > { %2332 = shalt.err (!%p2329_p6)
}
 0x301   : > { %s2471_s30 = smov 128   ;;  %s2472_s16 = smov 384  }
 0x302   : > { %s2473_s4 = smov 8  }
 0x303   : > { %1942 = dma.vmem_to_hbm [thread:$0]  (%p3133_p9), %s2983_s29, 1024, %s2981_s27, %s2989_s0, %s2471_s30, %s2472_s16, %s2473_s4  }
 0x304 PF: > { %p1962_p1 = scmp.ge.s32.totalorder %s2459_s6, 2  ;;  %s1502_s8 = sand.u32 1, %s2407_s18  }
 0x305   : > { %p3134_p4 = scmp.ne.s32.totalorder %s3112_s11, 0  ;;  %s1503_s24 = scalar_lea.sflag [#allocation5], %s1502_s8 }
 0x307   : > { %p1956_p12 = pnand %p1962_p1, %p3134_p4 }
 0x309   : > { %2402 = dma.done.wait (!%p1956_p12), %s1503_s24, 1024  }
 0x30a   : > { %2404 = vsyncadd (!%p1956_p12), %s1503_s24, 4294966272  ;;  %s22_s6 = sadd.s32 1, %s2459_s6   ;;  %s3136_s29 = sld [smem:[#allocation14_spill]] }
 0x30b   : > { %p3018_p8 = scmp.ge.s32.totalorder %s22_s6, 11   ;;  %s3137_s23 = sld [smem:[#allocation23_spill]] }
 0x30c   : > { %s3138_s27 = sld [smem:[#allocation15_spill]]  ;;  %s3139_s26 = sld [smem:[#allocation22_spill]] }
 0x30d   : > { %s3140_s11 = sld [smem:[#allocation18_spill]]  ;;  %s3141_s0 = sld [smem:[#allocation19_spill]] }
 0x30e   : > { %s3142_s17 = sld [smem:[#allocation20_spill]]  ;;  %s3143_s30 = sld [smem:[#allocation21_spill]] }
 0x30f   : > { %s3145_s18 = smov %s2411_s19  ;;  %s3146_s19 = smov %s2415_s20 }
 0x310   : > { %s3147_s20 = smov %s2607_s7  ;;  %s3148_s21 = smov %s2423_s22 }
 0x311   : > { %s3149_s22 = smov %s3136_s29  ;;  %s3150_s24 = smov %s2435_s25 }
 0x312   : > { %s3151_s25 = smov %s3138_s27  ;;  %21 = sbr.rel (!%p3018_p8) target bundleno = 17 (0x11), region = 107 }
 0x313   : > { %s3152_s27 = smov %s3140_s11  ;;  %s3153_s28 = smov %s3141_s0 }
 0x314   : > { %s3154_s29 = smov %s3142_s17 }
 0x319   :  { %1508 = vsyncpa [#allocation4], 1 }
 0x31a   :  { %1510 = vsyncpa [#allocation4 + $0x1], 1 }
 0x31b   :  { %1511 = vsyncpa [#allocation7], 1 }
 0x31c   :  { %1512 = vsyncpa [#allocation5], 1 }
 0x31d   :  { %1514 = vsyncpa [#allocation5 + $0x1], 1 }

</bundles_post_ra>
